<compile_context>
chip_gen: v5e
topology: v5e:2x2
jax: 0.10.0
libtpu: 0.0.40
codegen_flags: <defaults>
</compile_context>

<pallas_src>
import functools
import math

import jax
import jax.numpy as jnp
from jax.experimental import pallas as pl
from jax.experimental.pallas import tpu as pltpu

EPS = 1e-15
_MAX_TILE_B = 512        # (TB,1) temps are lane-sparse vregs; cap to avoid spills
_PARTIAL_LANES = 128     # one lane-aligned partial-sum block per tile (mean/sum)


def _round_up(x, m):
    return ((x + m - 1) // m) * m


def _cdiv(a, b):
    return (a + b - 1) // b


def _sublane_gran(dtype):
    # f32 -> 8, bf16/f16 -> 16, int8/fp8 -> 32 sublane packing granularity.
    return max(8, 32 // jnp.dtype(dtype).itemsize)


def _vmem_limit_bytes():
    """Generation-aware scoped-VMEM limit (~3/4 of physical, capped at 96 MiB)."""
    cap = None
    try:
        cap = int(getattr(pltpu.get_tpu_info(), "vmem_capacity_bytes", 0)) or None
    except Exception:
        cap = None
    if cap is None:
        cap = 64 * 1024 * 1024            # conservative fallback (v7x-sized VMEM)
    return max(16 * 1024 * 1024, min((cap * 3) // 4, 96 * 1024 * 1024))


def _pick_tile_b(B, C, in_itemsize, vmem_limit, gran):
    # Live set per row ~ double-buffered input block (2*C*itemsize) plus ~4
    # (TB,C) f32 temporaries (cast/sub feeding exp, e, masked e, column iota)
    # plus a handful of (TB,1) scalars.  Budget half the scoped limit.
    bytes_per_row = C * (2 * in_itemsize + 4 * 4) + 64
    tb = (vmem_limit // 2) // max(1, bytes_per_row)
    tb = (int(tb) // gran) * gran
    tb = max(gran, min(tb, _MAX_TILE_B))
    return min(tb, _round_up(B, gran))


def _rowwise_loss(z, tgt, pi, q, alpha):
    """Per-row Jensen loss for one (TB, C) logits tile.  Returns (TB, 1) f32.

    Exploits the one-hot structure of the target distribution so every branch
    of the reference reduces to one exp pass over the tile plus O(TB) per-row
    scalars.  eps*... cross terms on non-target columns are dropped
    (|error| ~ C*EPS per row, far below the validation tolerance)."""
    TB, C = z.shape
    col = jax.lax.broadcasted_iota(jnp.int32, (TB, C), 1)
    is_t = col == tgt                                             # (TB, C) bool

    # softmax pieces -- single EUP exp pass; f32 cast folded into the argument.
    rowmax = jnp.max(z, axis=1, keepdims=True)                    # native dtype
    e = jnp.exp(z.astype(jnp.float32) - rowmax.astype(jnp.float32))
    s = jnp.sum(e, axis=1, keepdims=True)                         # (TB, 1)
    e_t = jnp.sum(jnp.where(is_t, e, 0.0), axis=1, keepdims=True)
    p_t = e_t * pl.reciprocal(s, approx=False)                    # softmax @ target
    m_t = pi + (1.0 - pi) * p_t                                   # mixture @ target
    pte = p_t + EPS
    mte = m_t + EPS

    if q == 1.0 and alpha == 1.0:
        #   KL(onehot||mix) ~ -log(m_t)
        #   KL(pred  ||mix) ~ -(1-p_t)*log(1-pi) + p_t*(log p_t - log m_t)
        log_mte = jnp.log(mte)
        loss = pi * (-log_mte)
        if pi != 1.0:
            log1mpi = math.log(1.0 - pi)
            loss = loss + (1.0 - pi) * (
                -(1.0 - p_t) * log1mpi + p_t * (jnp.log(pte) - log_mte))
        return loss

    if q != 1.0 and alpha == 1.0:
        # rel_ent(p1, p2) = (1/(1-q)) * sum_c [pc1 - pc1^q * pc2^(1-q)]
        # non-target columns of onehot/mix collapse to constants / (1-pi)*p_c.
        inv1mq = 1.0 / (1.0 - q)
        one_pc = 1.0 + C * EPS                       # sum_c pc1, both operands
        mte_pow = mte ** (1.0 - q)
        loss = pi * (one_pc - mte_pow) * inv1mq      # rel_ent(onehot, mix)
        if pi != 1.0:
            c1 = (1.0 - pi) ** (1.0 - q)             # static python float
            rel2 = (one_pc - c1 * (1.0 - p_t) - (pte ** q) * mte_pow) * inv1mq
            loss = loss + (1.0 - pi) * rel2          # rel_ent(pred, mix)
        return loss

    if q == 1.0 and alpha != 1.0:
        # rel_ent(p1, p2) = 1/(alpha-1) * log(sum_c pc1^alpha * pc2^(1-alpha))
        loss = pi * (-jnp.log(mte))                  # rel_ent(onehot, mix)
        if pi != 1.0:
            c2 = (1.0 - pi) ** (1.0 - alpha)         # static python float
            inner = c2 * (1.0 - p_t) + (pte ** alpha) * (mte ** (1.0 - alpha))
            loss = loss + (1.0 - pi) * (1.0 / (alpha - 1.0)) * jnp.log(inner)
        return loss

    # TODO(synk): q != 1 and alpha != 1 has no branch in the reference module.
    raise NotImplementedError("q != 1 and alpha != 1 is undefined in the reference")


def _jensen_kernel(logits_ref, tgt_ref, out_ref, *, pi, q, alpha, reduction,
                   b_actual, tile_b):
    pid = pl.program_id(0)
    loss = _rowwise_loss(logits_ref[...], tgt_ref[...], pi, q, alpha)   # (TB, 1)

    # Mask rows of the (possibly ragged) last block that lie past the batch.
    row = jax.lax.broadcasted_iota(jnp.int32, (tile_b, 1), 0) + pid * tile_b
    loss = jnp.where(row < b_actual, loss, 0.0)

    if reduction == "none":
        # TODO(synk): a lane-dense (1, TB) store would avoid masked narrow
        # stores; kept (TB, 1) blocks since output bytes << input bytes here.
        out_ref[...] = loss
    else:
        # Per-tile partial sum into this tile's own (1, 128) output block
        # (lane 0 carries the value); the wrapper sums the partials.  Keeps
        # the grid fully parallel (no serial cross-tile accumulator).
        lane = jax.lax.broadcasted_iota(jnp.int32, (1, _PARTIAL_LANES), 1)
        out_ref[...] = jnp.where(lane == 0, jnp.sum(loss), 0.0)


def jensen_loss(logits, targets, *, num_classes, pi=0.5, q=1.0, alpha=1.0,
                reduction="mean", tile_b=None):
    """Pallas-backed equivalent of jensen_loss.forward(logits, targets).

    2-D logits (B, C); float32 or bfloat16 (upcast to f32 inside the kernel).
    """
    # TODO(synk): the reference also supports >2-D `predictions`; only the
    # common 2-D (B, num_classes) case is implemented here.
    assert reduction in ("mean", "sum", "none")
    pi, q, alpha = float(pi), float(q), float(alpha)
    if q != 1.0 and alpha != 1.0:
        raise NotImplementedError("q != 1 and alpha != 1 is undefined in the reference")

    B, C = logits.shape
    assert C == num_classes, "logits last dim must equal num_classes"

    gran = _sublane_gran(logits.dtype)
    vmem_limit = _vmem_limit_bytes()
    if tile_b is None:
        tb = _pick_tile_b(B, C, jnp.dtype(logits.dtype).itemsize, vmem_limit, gran)
    else:
        tb = max(gran, (int(tile_b) // gran) * gran)
        tb = min(tb, _round_up(B, gran))
    n_tiles = _cdiv(B, tb)

    # TODO(synk): no C-axis tiling yet -- for vocab-sized C the (tb, C) input
    # blocks alone can exceed VMEM even at the minimum tile; a flash-style
    # online max/sum over a C grid axis would be needed there.

    targets2d = targets.astype(jnp.int32).reshape(B, 1)

    kernel = functools.partial(
        _jensen_kernel, pi=pi, q=q, alpha=alpha, reduction=reduction,
        b_actual=B, tile_b=tb)

    in_specs = [
        pl.BlockSpec((tb, C), lambda i: (i, 0)),     # logits tile (ragged last)
        pl.BlockSpec((tb, 1), lambda i: (i, 0)),     # targets tile
    ]
    if reduction == "none":
        out_shape = jax.ShapeDtypeStruct((B, 1), jnp.float32)
        out_specs = pl.BlockSpec((tb, 1), lambda i: (i, 0))
    else:
        out_shape = jax.ShapeDtypeStruct((1, n_tiles * _PARTIAL_LANES), jnp.float32)
        out_specs = pl.BlockSpec((1, _PARTIAL_LANES), lambda i: (0, i))

    out = pl.pallas_call(
        kernel,
        out_shape=out_shape,
        grid=(n_tiles,),
        in_specs=in_specs,
        out_specs=out_specs,
        compiler_params=pltpu.CompilerParams(
            dimension_semantics=("parallel",),       # independent tiles (megacore)
            vmem_limit_bytes=vmem_limit),
    )(logits, targets2d)

    if reduction == "none":
        return out[:, 0]
    total = jnp.sum(out)                             # sum of per-tile partials
    if reduction == "mean":
        return total / B
    return total


def _jensen_loss_ref(logits, targets, *, num_classes, pi=0.5, q=1.0, alpha=1.0,
                     reduction="mean"):
    """Pure-JAX reference mirroring the PyTorch module (for validation)."""
    onehot = jax.nn.one_hot(targets, num_classes, dtype=jnp.float32)
    preds = jax.nn.softmax(logits.astype(jnp.float32), axis=1)
    mean_dist = pi * onehot + (1.0 - pi) * preds

    def rel_ent(p1, p2):
        pc1, pc2 = p1 + EPS, p2 + EPS
        if q == 1.0 and alpha == 1.0:
            return jnp.sum(pc1 * jnp.log(pc1 / pc2), axis=1)
        elif q != 1.0 and alpha == 1.0:
            lq = ((pc2 / pc1) ** (1.0 - q) - 1.0) / (1.0 - q)
            return jnp.sum(-pc1 * lq, axis=1)
        else:
            return (1.0 / (alpha - 1.0)) * jnp.log(
                jnp.sum(pc1 ** alpha * pc2 ** (1.0 - alpha), axis=1))

    loss = pi * rel_ent(onehot, mean_dist) + (1.0 - pi) * rel_ent(preds, mean_dist)
    if reduction == "mean":
        return jnp.mean(loss)
    elif reduction == "sum":
        return jnp.sum(loss)
    return loss


if __name__ == "__main__":
    key = jax.random.PRNGKey(0)
    k1, k2 = jax.random.split(key)

    # B=300 with tile_b=128 exercises multi-tile grids, a ragged last block
    # (no wrapper-side padding) and the parallel per-tile partial sums.
    B, C = 300, 32
    logits = jax.random.normal(k1, (B, C), dtype=jnp.float32)
    targets = jax.random.randint(k2, (B,), 0, C, dtype=jnp.int32)

    def check(name, got, want, rtol=1e-5, atol=1e-6):
        got = jax.block_until_ready(got)
        assert jnp.allclose(got, want, rtol=rtol, atol=atol), (name, got, want)

    # q=1, alpha=1 fast path: multi-tile mean / none
    check("mean",
          jensen_loss(logits, targets, num_classes=C, reduction="mean", tile_b=128),
          _jensen_loss_ref(logits, targets, num_classes=C, reduction="mean"))
    check("none",
          jensen_loss(logits, targets, num_classes=C, reduction="none", tile_b=128),
          _jensen_loss_ref(logits, targets, num_classes=C, reduction="none"))

    # auto tile size (single tile here), sum
    check("sum_auto",
          jensen_loss(logits, targets, num_classes=C, reduction="sum"),
          _jensen_loss_ref(logits, targets, num_classes=C, reduction="sum"),
          rtol=1e-5, atol=1e-4)

    # collapsed general paths: q != 1 and alpha != 1
    check("q2_sum",
          jensen_loss(logits, targets, num_classes=C, q=2.0, reduction="sum",
                      tile_b=128),
          _jensen_loss_ref(logits, targets, num_classes=C, q=2.0, reduction="sum"),
          rtol=1e-5, atol=1e-4)
    check("a2_mean",
          jensen_loss(logits, targets, num_classes=C, alpha=2.0, reduction="mean",
                      tile_b=128),
          _jensen_loss_ref(logits, targets, num_classes=C, alpha=2.0,
                           reduction="mean"))

    # bf16 logits (f32 cast folded into the exp argument inside the kernel)
    check("bf16_mean",
          jensen_loss(logits.astype(jnp.bfloat16), targets, num_classes=C,
                      reduction="mean"),
          _jensen_loss_ref(logits.astype(jnp.bfloat16), targets, num_classes=C,
                           reduction="mean"),
          rtol=1e-4, atol=1e-5)

    print("KERNEL_OK")
</pallas_src>

<mosaic_0001>
module attributes {stable_mosaic.version = 11 : i64} {
  func.func @_jensen_kernel(%arg0: i32, %arg1: memref<128x32xf32, #tpu.memory_space<vmem>>, %arg2: memref<128x1xi32, #tpu.memory_space<vmem>>, %arg3: memref<1x128xf32, #tpu.memory_space<vmem>>) attributes {dimension_semantics = [#tpu.dimension_semantics<parallel>], iteration_bounds = array<i64: 3>, scalar_prefetch = 0 : i64, scratch_operands = 0 : i64, tpu.core_type = #tpu.core_type<tc>, window_params = [{transform_indices = @transform_0, window_bounds = array<i64: 128, 32>}, {transform_indices = @transform_1, window_bounds = array<i64: 128, 1>}, {transform_indices = @transform_2, window_bounds = array<i64: 1, 128>}]} {
    %c0 = arith.constant 0 : index
    %c0_0 = arith.constant 0 : index
    %0 = vector.load %arg1[%c0, %c0_0] : memref<128x32xf32, #tpu.memory_space<vmem>>, vector<128x32xf32>
    %c0_1 = arith.constant 0 : index
    %c0_2 = arith.constant 0 : index
    %1 = vector.load %arg2[%c0_1, %c0_2] : memref<128x1xi32, #tpu.memory_space<vmem>>, vector<128x1xi32>
    %2 = tpu.iota {dimensions = array<i32: 1>} : vector<128x32xi32>
    %3 = vector.broadcast %1 : vector<128x1xi32> to vector<128x32xi32>
    %4 = arith.cmpi eq, %2, %3 : vector<128x32xi32>
    %cst = arith.constant dense<0xFF800000> : vector<128xf32>
    %5 = vector.multi_reduction <maximumf>, %0, %cst [1] : vector<128x32xf32> to vector<128xf32>
    %6 = vector.shape_cast %5 : vector<128xf32> to vector<128x1xf32>
    %7 = vector.broadcast %6 : vector<128x1xf32> to vector<128x32xf32>
    %8 = arith.subf %0, %7 : vector<128x32xf32>
    %9 = math.exp %8 : vector<128x32xf32>
    %cst_3 = arith.constant dense<0.000000e+00> : vector<128xf32>
    %10 = vector.multi_reduction <add>, %9, %cst_3 [1] : vector<128x32xf32> to vector<128xf32>
    %11 = vector.shape_cast %10 : vector<128xf32> to vector<128x1xf32>
    %cst_4 = arith.constant 0.000000e+00 : f32
    %12 = vector.broadcast %cst_4 : f32 to vector<128x32xf32>
    %13 = arith.select %4, %9, %12 : vector<128x32xi1>, vector<128x32xf32>
    %cst_5 = arith.constant dense<0.000000e+00> : vector<128xf32>
    %14 = vector.multi_reduction <add>, %13, %cst_5 [1] : vector<128x32xf32> to vector<128xf32>
    %15 = vector.shape_cast %14 : vector<128xf32> to vector<128x1xf32>
    %16 = tpu.reciprocal %11 : vector<128x1xf32> -> vector<128x1xf32>
    %17 = arith.mulf %15, %16 : vector<128x1xf32>
    %cst_6 = arith.constant 5.000000e-01 : f32
    %18 = vector.broadcast %cst_6 : f32 to vector<128x1xf32>
    %19 = arith.mulf %18, %17 : vector<128x1xf32>
    %cst_7 = arith.constant 5.000000e-01 : f32
    %20 = vector.broadcast %cst_7 : f32 to vector<128x1xf32>
    %21 = arith.addf %20, %19 : vector<128x1xf32>
    %cst_8 = arith.constant 1.000000e-15 : f32
    %22 = vector.broadcast %cst_8 : f32 to vector<128x1xf32>
    %23 = arith.addf %17, %22 : vector<128x1xf32>
    %cst_9 = arith.constant 1.000000e-15 : f32
    %24 = vector.broadcast %cst_9 : f32 to vector<128x1xf32>
    %25 = arith.addf %21, %24 : vector<128x1xf32>
    %26 = math.log %25 : vector<128x1xf32>
    %cst_10 = arith.constant 0.000000e+00 : f32
    %27 = vector.broadcast %cst_10 : f32 to vector<128x1xf32>
    %28 = arith.subf %27, %26 : vector<128x1xf32>
    %cst_11 = arith.constant 5.000000e-01 : f32
    %29 = vector.broadcast %cst_11 : f32 to vector<128x1xf32>
    %30 = arith.mulf %29, %28 : vector<128x1xf32>
    %cst_12 = arith.constant 1.000000e+00 : f32
    %31 = vector.broadcast %cst_12 : f32 to vector<128x1xf32>
    %32 = arith.subf %31, %17 : vector<128x1xf32>
    %cst_13 = arith.constant 0.000000e+00 : f32
    %33 = vector.broadcast %cst_13 : f32 to vector<128x1xf32>
    %34 = arith.subf %33, %32 : vector<128x1xf32>
    %cst_14 = arith.constant -0.693147182 : f32
    %35 = vector.broadcast %cst_14 : f32 to vector<128x1xf32>
    %36 = arith.mulf %34, %35 : vector<128x1xf32>
    %37 = math.log %23 : vector<128x1xf32>
    %38 = arith.subf %37, %26 : vector<128x1xf32>
    %39 = arith.mulf %17, %38 : vector<128x1xf32>
    %40 = arith.addf %36, %39 : vector<128x1xf32>
    %cst_15 = arith.constant 5.000000e-01 : f32
    %41 = vector.broadcast %cst_15 : f32 to vector<128x1xf32>
    %42 = arith.mulf %41, %40 : vector<128x1xf32>
    %43 = arith.addf %30, %42 : vector<128x1xf32>
    %44 = tpu.iota {dimensions = array<i32: 0>} : vector<128x1xi32>
    %c128_i32 = arith.constant 128 : i32
    %45 = arith.muli %arg0, %c128_i32 : i32
    %46 = vector.broadcast %45 : i32 to vector<128x1xi32>
    %47 = arith.addi %44, %46 : vector<128x1xi32>
    %c300_i32 = arith.constant 300 : i32
    %48 = vector.broadcast %c300_i32 : i32 to vector<128x1xi32>
    %49 = arith.cmpi slt, %47, %48 : vector<128x1xi32>
    %cst_16 = arith.constant 0.000000e+00 : f32
    %50 = vector.broadcast %cst_16 : f32 to vector<128x1xf32>
    %51 = arith.select %49, %43, %50 : vector<128x1xi1>, vector<128x1xf32>
    %52 = tpu.iota {dimensions = array<i32: 1>} : vector<1x128xi32>
    %c0_i32 = arith.constant 0 : i32
    %53 = vector.broadcast %c0_i32 : i32 to vector<1x128xi32>
    %54 = arith.cmpi eq, %52, %53 : vector<1x128xi32>
    %55 = vector.shape_cast %51 : vector<128x1xf32> to vector<1x128x1xf32>
    %cst_17 = arith.constant dense<0.000000e+00> : vector<1xf32>
    %56 = vector.multi_reduction <add>, %55, %cst_17 [1, 2] : vector<1x128x1xf32> to vector<1xf32>
    %57 = vector.shape_cast %56 : vector<1xf32> to vector<1x1x1xf32>
    %58 = vector.extract %57[0, 0, 0] : f32 from vector<1x1x1xf32>
    %cst_18 = arith.constant 0.000000e+00 : f32
    %59 = vector.broadcast %58 : f32 to vector<1x128xf32>
    %60 = vector.broadcast %cst_18 : f32 to vector<1x128xf32>
    %61 = arith.select %54, %59, %60 : vector<1x128xi1>, vector<1x128xf32>
    %c0_19 = arith.constant 0 : index
    %c0_20 = arith.constant 0 : index
    %62 = vector.load %arg3[%c0_19, %c0_20] : memref<1x128xf32, #tpu.memory_space<vmem>>, vector<1x128xf32>
    tpu.vector_store %arg3[%c0_19, %c0_20], %61 {strides = array<i32>} : memref<1x128xf32, #tpu.memory_space<vmem>>, vector<1x128xf32>,
    return
  }
  func.func @transform_0(%arg0: i32) -> (i32, i32) {
    %c0_i32 = arith.constant 0 : i32
    %c0_i32_0 = arith.constant 0 : i32
    return %arg0, %c0_i32 : i32, i32
  }
  func.func @transform_1(%arg0: i32) -> (i32, i32) {
    %c0_i32 = arith.constant 0 : i32
    %c0_i32_0 = arith.constant 0 : i32
    return %arg0, %c0_i32 : i32, i32
  }
  func.func @transform_2(%arg0: i32) -> (i32, i32) {
    %c0_i32 = arith.constant 0 : i32
    %c0_i32_0 = arith.constant 0 : i32
    return %c0_i32, %arg0 : i32, i32
  }
}

</mosaic_0001>

<bundles_post_ra>
// kernel: tpu_custom_call.1
= control target key start
LH: loop header
LB: loop body
LE: loop exit
PB: predicated region body
PF: predicated region fallthrough
CT: control target
= control target key end

     0   :  { %7 = vsyncpa [#allocation3], 0  ;;  %s2475_s0 = inlined_call_operand.vmem [shape: f32[300,32], index: 0, kind: input, shape index: {}]   ;;  %s2476_s1 = inlined_call_operand.vmem [shape: s32[300,1], index: 1, kind: input, shape index: {}]   ;;  %s2477_s2 = inlined_call_operand.hbm [shape: f32[1,384], index: 2, kind: output, shape index: {}]  }
   0x1   :  { %9 = vsyncpa [#allocation3 + $0x1], 0  ;;  %s1496_s9 = smov 0   ;;  %s1498_s10 = smov 0  }
   0x2   :  { %s1500_s11 = smov 0   ;;  %s1502_s12 = smov 0  }
   0x3 LB: > { %s1517_s13 = sadd.s32 4294967295, %s1478_s12   ;;  %s1232_s14 = sadd.s32 4294967294, %s1478_s12   ;;  %s1478_s12 = sphi %s1502_s12, %s2531_s12   ;;  %s1474_s11 = sphi %s1500_s11, %s2530_s11   ;;  %s1470_s10 = sphi %s1498_s10, %s2529_s10   ;;  %s1466_s9 = sphi %s1496_s9, %s2528_s9  }
   0x4   : > { %s1521_s15 = sadd.s32 1, %s1478_s12   ;;  %s74_s16 = sadd.s32 1, %s1474_s11 }
   0x5   : > { %s71_s17 = ssub.s32 %s1478_s12, %s1521_s15  ;;  %p84_p0 = scmp.ne.s32.totalorder %s1474_s11, %s1470_s10 }
   0x6   : > { %p72_p1 = scmp.eq.s32.totalorder %s71_s17, 0  ;;  %p85_p2 = scmp.eq.s32.totalorder %s1517_s13, 2 }
   0x7   : > { %p90_p3 = scmp.ne.s32.totalorder %s1470_s10, %s1466_s9  ;;  %p91_p4 = scmp.eq.s32.totalorder %s1232_s14, 2 }
   0x8   : > { %s1532_s18 = scalar_select %p72_p1, %s1474_s11, %s74_s16  }
   0x9   : > { %p1534_p5 = por %p85_p2, %p84_p0  ;;  %p1538_p6 = por %p91_p4, %p90_p3 }
   0xa   : > { %p1235_p7 = scmp.ge.s32.totalorder %s1478_s12, 1  ;;  %p143_p8 = scmp.lt.s32.totalorder %s1478_s12, 4 }
   0xc   : > { %p144_p9 = pnand %p1235_p7, %p143_p8 }
   0xd   : > { %s1236_s21 = sshll.u32 (!%p144_p9), %s1517_s13, 4  ;;  %s1240_s29 = sshll.u32 (!%p144_p9), %s1517_s13, 7 }
   0xe   : > { %147 = sbr.rel (%p144_p9) target bundleno = 637 (0x27d), region = 28  ;;  %p182_p10 = scmp.lt.s32.totalorder (!%p144_p9), %s1236_s21, 37 }
   0xf   : > { %s175_s30 = sand.u32 (!%p144_p9), 1, %s1470_s10   ;;  %s1161_s5 = scalar_lea.hbm (!%p144_p9), %s2477_s2, %s1517_s13 }
  0x10   : > { %s176_s6 = scalar_lea.vmem (!%p144_p9), [#allocation2], %s175_s30  ;;  %s1165_s8 = sshll.u32 (!%p144_p9), %s1161_s5, 4  ;;  %s1166_s8 = int_to_ptr.hbm [resolvable:$true] %s1165_s8 }
  0x11   : > { %s1163_s7 = sshll.u32 (!%p144_p9), %s176_s6, 4  ;;  %s1153_s16 = scalar_lea.sflag (!%p144_p9), [#allocation3], %s175_s30  ;;  %s1164_s7 = int_to_ptr.vmem [resolvable:$true] %s1163_s7 }
  0x12   : > { %s1430_s17 = sshra.s32 (!%p144_p9), %s1166_s8, 4  ;;  %s1436_s23 = scalar_lea.hbm (!%p144_p9), %s2477_s2, 3  ;;  %s1431_s17 = int_to_ptr.hbm [resolvable:$true] %s1430_s17 }
  0x13   : > { %s2533_s21 = smov (!%p182_p10, %s1236_s21), 37  ;;  %vm303_vm0 = vcmask 261120   ;;  %v1480_v12 = vmov 0   ;;  %p1437_p0 = scmp.lt.s32.totalorder %s1431_s17, %s2477_s2 }
  0x14   : > { %s1237_s22 = sshll.u32 %s2533_s21, 3  ;;  %1286 = vset.pattern.permute.xlu1 %v1480_v12  ;;  %1285 = vset.pattern.permute.xlu0 %v1480_v12  ;;  %s1432_s21 = scalar_lea.hbm %s1431_s17, 1 }
  0x15   : > { %s1553_s25 = scalar_lea.vmem %s2475_s0, %s1237_s22  ;;  %1287 = vset.pattern.permute.xlu2 %v1480_v12  ;;  %s1640_s28 = scalar_lea.vmem %s2476_s1, %s1237_s22 }
  0x16   : > { %v1556_v0 = vld [vmem:[%s1553_s25 + $0x20] sm:$0xff]  ;;  %v1559_v1 = vld [vmem:[%s1553_s25 + $0x10] sm:$0xff]  ;;  %v1571_v6 = vld [vmem:[%s1553_s25 + $0x28] sm:$0xff]  ;;  %p1433_p11 = scmp.ne.s32.totalorder %s1431_s17, %s1432_s21  ;;  %p1438_p1 = scmp.lt.s32.totalorder %s1436_s23, %s1432_s21 }
  0x17   : > { %v1562_v2 = vld [vmem:[%s1553_s25] sm:$0xff]  ;;  %v316_v3 = vsel %vm303_vm0, %v1556_v0, -inf  ;;  %v310_v4 = vsel %vm303_vm0, %v1559_v1, -inf  ;;  %v1574_v7 = vld [vmem:[%s1553_s25 + $0x18] sm:$0xff]  ;;  %v1577_v8 = vld [vmem:[%s1553_s25 + $0x8] sm:$0xff]  ;;  %v319_v9 = vsel %vm303_vm0, %v1571_v6, -inf }
  0x18   : > { %v304_v5 = vsel %vm303_vm0, %v1562_v2, -inf  ;;  %317 = vmax.xlane.f32.xlu2 %v316_v3  ;;  %311 = vmax.xlane.f32.xlu1 %v310_v4  ;;  %v313_v10 = vsel %vm303_vm0, %v1574_v7, -inf  ;;  %v307_v11 = vsel %vm303_vm0, %v1577_v8, -inf  ;;  %v1586_v13 = vld [vmem:[%s1553_s25 + $0x40] sm:$0xff]  ;;  %v1589_v14 = vld [vmem:[%s1553_s25 + $0x38] sm:$0xff]  ;;  %v1592_v15 = vld [vmem:[%s1553_s25 + $0x30] sm:$0xff]  ;;  %p1434_p12 = pnand %p1433_p11, %p1534_p5  ;;  %p1439_p2 = por %p1438_p1, %p1437_p0 }
  0x19   : > { %305 = vmax.xlane.f32.xlu0 %v304_v5  ;;  %v328_v16 = vsel %vm303_vm0, %v1586_v13, -inf  ;;  %v325_v17 = vsel %vm303_vm0, %v1589_v14, -inf  ;;  %v322_v18 = vsel %vm303_vm0, %v1592_v15, -inf  ;;  %v1601_v19 = vld [vmem:[%s1553_s25 + $0x58] sm:$0xff]  ;;  %v1604_v20 = vld [vmem:[%s1553_s25 + $0x50] sm:$0xff]  ;;  %v1607_v21 = vld [vmem:[%s1553_s25 + $0x48] sm:$0xff] }
  0x1a   : > { %v337_v22 = vsel %vm303_vm0, %v1601_v19, -inf  ;;  %v334_v23 = vsel %vm303_vm0, %v1604_v20, -inf  ;;  %v331_v24 = vsel %vm303_vm0, %v1607_v21, -inf  ;;  %v1616_v25 = vld [vmem:[%s1553_s25 + $0x70] sm:$0xff]  ;;  %v1619_v26 = vld [vmem:[%s1553_s25 + $0x68] sm:$0xff]  ;;  %v1622_v27 = vld [vmem:[%s1553_s25 + $0x60] sm:$0xff]  ;;  %p1435_p13 = pneg %p1434_p12 }
  0x1b   : > { %v346_v28 = vsel %vm303_vm0, %v1616_v25, -inf  ;;  %v343_v29 = vsel %vm303_vm0, %v1619_v26, -inf  ;;  %v340_v30 = vsel %vm303_vm0, %v1622_v27, -inf  ;;  %v1631_v31 = vld [vmem:[%s1553_s25 + $0x78] sm:$0xff]  ;;  %v221_v33 = vld [vmem:[%s1640_s28] sm:$0xff]  ;;  %v222_v34 = vld [vmem:[%s1640_s28 + $0x8] sm:$0xff] }
  0x1c   : > { %v349_v32 = vsel %vm303_vm0, %v1631_v31, -inf  ;;  %v227_v35 = vld [vmem:[%s1640_s28 + $0x30] sm:$0xff]  ;;  %v224_v37 = vld [vmem:[%s1640_s28 + $0x18] sm:$0xff]  ;;  %v230_v38 = vld [vmem:[%s1640_s28 + $0x48] sm:$0xff]  ;;  %p1440_p3 = pnand %p1439_p2, %p1435_p13 }
  0x1d   : > { %v223_v36 = vld [vmem:[%s1640_s28 + $0x10] sm:$0xff]  ;;  %v225_v39 = vld [vmem:[%s1640_s28 + $0x20] sm:$0xff]  ;;  %v226_v40 = vld [vmem:[%s1640_s28 + $0x28] sm:$0xff] }
  0x1e   : > { %v233_v41 = vld [vmem:[%s1640_s28 + $0x60] sm:$0xff]  ;;  %v228_v42 = vld [vmem:[%s1640_s28 + $0x38] sm:$0xff]  ;;  %v231_v44 = vld [vmem:[%s1640_s28 + $0x50] sm:$0xff] }
  0x1f   : > { %v229_v43 = vld [vmem:[%s1640_s28 + $0x40] sm:$0xff]  ;;  %v232_v45 = vld [vmem:[%s1640_s28 + $0x58] sm:$0xff]  ;;  %v234_v46 = vld [vmem:[%s1640_s28 + $0x68] sm:$0xff] }
  0x20   : > { %320 = vmax.xlane.f32.xlu2 %v319_v9  ;;  %314 = vmax.xlane.f32.xlu1 %v313_v10  ;;  %v235_v47 = vld [vmem:[%s1640_s28 + $0x70] sm:$0xff] }
  0x21   : > { %308 = vmax.xlane.f32.xlu0 %v307_v11 }
  0x28   : > { %329 = vmax.xlane.f32.xlu2 %v328_v16  ;;  %326 = vmax.xlane.f32.xlu1 %v325_v17 }
  0x29   : > { %323 = vmax.xlane.f32.xlu0 %v322_v18 }
  0x30   : > { %338 = vmax.xlane.f32.xlu2 %v337_v22  ;;  %335 = vmax.xlane.f32.xlu1 %v334_v23 }
  0x31   : > { %332 = vmax.xlane.f32.xlu0 %v331_v24 }
  0x38   : > { %347 = vmax.xlane.f32.xlu2 %v346_v28  ;;  %344 = vmax.xlane.f32.xlu1 %v343_v29 }
  0x39   : > { %341 = vmax.xlane.f32.xlu0 %v340_v30 }
  0x40   : > { %350 = vmax.xlane.f32.xlu2 %v349_v32 }
  0x4d   : > { %240 = vperm.xlu0 %1285, %v221_v33  }
  0x51   : > { %243 = vperm.xlu1 %1286, %v222_v34   ;;  %v236_v34 = vld [vmem:[%s1640_s28 + $0x78] sm:$0xff] }
  0x55   : > { %258 = vperm.xlu0 %1285, %v227_v35  }
  0x58   : > { %246 = vperm.xlu2 %1287, %v223_v36  }
  0x59   : > { %249 = vperm.xlu1 %1286, %v224_v37  }
  0x5d   : > { %267 = vperm.xlu0 %1285, %v230_v38  }
  0x60   : > { %252 = vperm.xlu2 %1287, %v225_v39  }
  0x61   : > { %255 = vperm.xlu1 %1286, %v226_v40  }
  0x65   : > { %276 = vperm.xlu0 %1285, %v233_v41   ;;  %v237_v41 = vlaneseq }
  0x68   : > { %261 = vperm.xlu2 %1287, %v228_v42  }
  0x69   : > { %264 = vperm.xlu1 %1286, %v229_v43  }
  0x70   : > { %270 = vperm.xlu2 %1287, %v231_v44  }
  0x71   : > { %273 = vperm.xlu1 %1286, %v232_v45  }
  0x78   : > { %279 = vperm.xlu2 %1287, %v234_v46   ;;  %v1707_v46 = vand.u32 127, %v237_v41 }
  0x80   : > { %282 = vperm.xlu2 %1287, %v235_v47  }
  0x8b   : > { %v318_v48 = vpop.xlane.xlu2 %317  ;;  %v312_v49 = vpop.xlane.xlu1 %311 }
  0x8c   : > { %v306_v50 = vpop.xlane.xlu0 %305  ;;  %v354_v57 = vsub.f32 %v1559_v1, %v312_v49 }
  0x8d   : > { %v352_v51 = vsub.f32 %v1562_v2, %v306_v50  ;;  %v356_v2 = vsub.f32 %v1556_v0, %v318_v48 }
  0x8e   : > { %v372_v62 = vmul.f32 1.442695, %v354_v57 }
  0x8f   : > { %v368_v52 = vmul.f32 1.442695, %v352_v51  ;;  %v376_v5 = vmul.f32 1.442695, %v356_v2 }
  0x91   : > { %1288 = vpow2.f32 %v368_v52 }
  0x93   : > { %v321_v54 = vpop.xlane.xlu2 %320  ;;  %v315_v55 = vpop.xlane.xlu1 %314 }
  0x94   : > { %v309_v53 = vpop.xlane.xlu0 %308  ;;  %v355_v60 = vsub.f32 %v1574_v7, %v315_v55  ;;  %v357_v3 = vsub.f32 %v1571_v6, %v321_v54 }
  0x95   : > { %v353_v56 = vsub.f32 %v1577_v8, %v309_v53 }
  0x96   : > { %v374_v63 = vmul.f32 1.442695, %v355_v60  ;;  %v378_v9 = vmul.f32 1.442695, %v357_v3 }
  0x97   : > { %v370_v58 = vmul.f32 1.442695, %v353_v56  ;;  %v1660_v59 = vpop.eup %1288 }
  0x98   : > { %v400_v61 = vsel %vm303_vm0, %v1660_v59, 0.0 }
  0x99   : > { %1290 = vpow2.f32 %v370_v58 }
  0x9a   : > { %1292 = vpow2.f32 %v372_v62 }
  0x9b   : > { %401 = vadd.xlane.f32.xlu1 %v400_v61  ;;  %v1667_v4 = vpop.xlane.xlu2 %329  ;;  %1294 = vpow2.f32 %v374_v63  ;;  %v327_v11 = vpop.xlane.xlu1 %326 }
  0x9c   : > { %v324_v8 = vpop.xlane.xlu0 %323  ;;  %1296 = vpow2.f32 %v376_v5  ;;  %v359_v12 = vsub.f32 %v1589_v14, %v327_v11 }
  0x9d   : > { %v358_v0 = vsub.f32 %v1592_v15, %v324_v8  ;;  %1298 = vpow2.f32 %v378_v9 }
  0x9e   : > { %v382_v28 = vmul.f32 1.442695, %v359_v12 }
  0x9f   : > { %v1669_v1 = vpop.eup %1290  ;;  %v380_v18 = vmul.f32 1.442695, %v358_v0 }
  0xa0   : > { %v403_v7 = vsel %vm303_vm0, %v1669_v1, 0.0  ;;  %v1673_v10 = vpop.eup %1292 }
  0xa1   : > { %404 = vadd.xlane.f32.xlu0 %v403_v7  ;;  %v1676_v6 = vpop.eup %1294  ;;  %v406_v16 = vsel %vm303_vm0, %v1673_v10, 0.0  ;;  %1300 = vpow2.f32 %v380_v18 }
  0xa2   : > { %v409_v22 = vsel %vm303_vm0, %v1676_v6, 0.0  ;;  %v1683_v23 = vpop.eup %1296  ;;  %1302 = vpow2.f32 %v382_v28 }
  0xa3   : > { %v339_v17 = vpop.xlane.xlu2 %338  ;;  %v1685_v15 = vpop.eup %1298  ;;  %v412_v29 = vsel %vm303_vm0, %v1683_v23, 0.0 }
  0xa4   : > { %v333_v24 = vpop.xlane.xlu0 %332  ;;  %v415_v30 = vsel %vm303_vm0, %v1685_v15, 0.0  ;;  %v336_v32 = vpop.xlane.xlu1 %335  ;;  %v363_v48 = vsub.f32 %v1601_v19, %v339_v17 }
  0xa5   : > { %v361_v14 = vsub.f32 %v1607_v21, %v333_v24  ;;  %v362_v39 = vsub.f32 %v1604_v20, %v336_v32 }
  0xa6   : > { %v390_v51 = vmul.f32 1.442695, %v363_v48 }
  0xa7   : > { %v386_v33 = vmul.f32 1.442695, %v361_v14  ;;  %v1693_v35 = vpop.eup %1300  ;;  %v388_v44 = vmul.f32 1.442695, %v362_v39 }
  0xa8   : > { %v1697_v21 = vpop.eup %1302  ;;  %v418_v38 = vsel %vm303_vm0, %v1693_v35, 0.0 }
  0xa9   : > { %407 = vadd.xlane.f32.xlu2 %v406_v16  ;;  %410 = vadd.xlane.f32.xlu0 %v409_v22  ;;  %1304 = vpow2.f32 %v386_v33  ;;  %v421_v40 = vsel %vm303_vm0, %v1697_v21, 0.0 }
  0xaa   : > { %1306 = vpow2.f32 %v388_v44 }
  0xab   : > { %v1695_v36 = vpop.xlane.xlu2 %347  ;;  %1308 = vpow2.f32 %v390_v51 }
  0xac   : > { %v342_v37 = vpop.xlane.xlu0 %341  ;;  %v345_v43 = vpop.xlane.xlu1 %344  ;;  %v366_v7 = vsub.f32 %v1616_v25, %v1695_v36 }
  0xad   : > { %v364_v19 = vsub.f32 %v1622_v27, %v342_v37  ;;  %v365_v3 = vsub.f32 %v1619_v26, %v345_v43 }
  0xaf   : > { %v1704_v42 = vpop.eup %1304  ;;  %v392_v58 = vmul.f32 1.442695, %v364_v19 }
  0xb0   : > { %v427_v47 = vsel %vm303_vm0, %v1704_v42, 0.0  ;;  %v1717_v54 = vpop.eup %1306 }
  0xb1   : > { %413 = vadd.xlane.f32.xlu2 %v412_v29  ;;  %416 = vadd.xlane.f32.xlu0 %v415_v30  ;;  %v430_v57 = vsel %vm303_vm0, %v1717_v54, 0.0  ;;  %v1726_v60 = vpop.eup %1308  ;;  %1310 = vpow2.f32 %v392_v58 }
  0xb2   : > { %v433_v2 = vsel %vm303_vm0, %v1726_v60, 0.0 }
  0xb3   : > { %v351_v45 = vpop.xlane.xlu2 %350 }
  0xb4   : > { %285 = vperm.xlu1 %1286, %v236_v34   ;;  %v367_v0 = vsub.f32 %v1631_v31, %v351_v45 }
  0xb6   : > { %v398_v17 = vmul.f32 1.442695, %v367_v0 }
  0xb9   : > { %419 = vadd.xlane.f32.xlu2 %v418_v38  ;;  %422 = vadd.xlane.f32.xlu0 %v421_v40 }
  0xbb   : > { %v247_v55 = vpop.permute.xlu2 %246 }
  0xbc   : > { %vm289_vm3 = vcmp.eq.s32.totalorder %v1707_v46, %v247_v55 }
  0xbd   : > { %v450_v61 = vsel %vm289_vm3, %v1673_v10, 0.0  ;;  %v396_v10 = vmul.f32 1.442695, %v366_v7 }
  0xbe   : > { %v470_v63 = vsel %vm303_vm0, %v450_v61, 0.0 }
  0xbf   : > { %v241_v20 = vpop.permute.xlu0 %240 }
  0xc0   : > { %vm287_vm1 = vcmp.eq.s32.totalorder %v1707_v46, %v241_v20 }
  0xc1   : > { %428 = vadd.xlane.f32.xlu2 %v427_v47  ;;  %v448_v49 = vsel %vm287_vm1, %v1660_v59, 0.0  ;;  %v360_v59 = vsub.f32 %v1586_v13, %v1667_v4  ;;  %v1734_v13 = vpop.eup %1310  ;;  %v394_v4 = vmul.f32 1.442695, %v365_v3 }
  0xc2   : > { %v464_v50 = vsel %vm303_vm0, %v448_v49, 0.0  ;;  %v436_v9 = vsel %vm303_vm0, %v1734_v13, 0.0 }
  0xc3   : > { %465 = vadd.xlane.f32.xlu0 %v464_v50  ;;  %v244_v52 = vpop.permute.xlu1 %243  ;;  %v384_v62 = vmul.f32 1.442695, %v360_v59 }
  0xc4   : > { %vm288_vm2 = vcmp.eq.s32.totalorder %v1707_v46, %v244_v52 }
  0xc5   : > { %v449_v53 = vsel %vm288_vm2, %v1669_v1, 0.0  ;;  %v253_v1 = vpop.permute.xlu2 %252  ;;  %1312 = vpow2.f32 %v384_v62 }
  0xc6   : > { %v467_v56 = vsel %vm303_vm0, %v449_v53, 0.0  ;;  %1314 = vpow2.f32 %v394_v4  ;;  %vm291_vm5 = vcmp.eq.s32.totalorder %v1707_v46, %v253_v1 }
  0xc7   : > { %v452_v25 = vsel %vm291_vm5, %v1683_v23, 0.0  ;;  %1316 = vpow2.f32 %v396_v10  ;;  %v259_v18 = vpop.permute.xlu0 %258 }
  0xc8   : > { %v476_v22 = vsel %vm303_vm0, %v452_v25, 0.0  ;;  %1318 = vpow2.f32 %v398_v17  ;;  %vm293_vm7 = vcmp.eq.s32.totalorder %v1707_v46, %v259_v18 }
  0xc9   : > { %468 = vadd.xlane.f32.xlu2 %v467_v56  ;;  %v454_v30 = vsel %vm293_vm7, %v1693_v35, 0.0 }
  0xcb   : > { %431 = vadd.xlane.f32.xlu0 %v430_v57  ;;  %v250_v27 = vpop.permute.xlu1 %249  ;;  %v1313_v26 = vpop.eup %1312 }
  0xcc   : > { %vm290_vm4 = vcmp.eq.s32.totalorder %v1707_v46, %v250_v27  ;;  %v1315_v16 = vpop.eup %1314 }
  0xcd   : > { %v451_v5 = vsel %vm290_vm4, %v1676_v6, 0.0  ;;  %v262_v11 = vpop.permute.xlu2 %261  ;;  %v424_v6 = vsel %vm303_vm0, %v1313_v26, 0.0  ;;  %v439_v24 = vsel %vm303_vm0, %v1315_v16, 0.0  ;;  %v1317_v31 = vpop.eup %1316 }
  0xce   : > { %v473_v8 = vsel %vm303_vm0, %v451_v5, 0.0  ;;  %v442_v32 = vsel %vm303_vm0, %v1317_v31, 0.0  ;;  %v1319_v33 = vpop.eup %1318  ;;  %vm294_vm8 = vcmp.eq.s32.totalorder %v1707_v46, %v262_v11 }
  0xcf   : > { %v268_v34 = vpop.permute.xlu0 %267  ;;  %v445_v36 = vsel %vm303_vm0, %v1319_v33, 0.0  ;;  %v455_v37 = vsel %vm294_vm8, %v1697_v21, 0.0 }
  0xd0   : > { %vm296_vm10 = vcmp.eq.s32.totalorder %v1707_v46, %v268_v34  ;;  %v485_v39 = vsel %vm303_vm0, %v455_v37, 0.0 }
  0xd1   : > { %471 = vadd.xlane.f32.xlu2 %v470_v63  ;;  %v457_v44 = vsel %vm296_vm10, %v1704_v42, 0.0 }
  0xd2   : > { %v491_v21 = vsel %vm303_vm0, %v457_v44, 0.0 }
  0xd3   : > { %434 = vadd.xlane.f32.xlu0 %v433_v2  ;;  %v256_v12 = vpop.permute.xlu1 %255 }
  0xd4   : > { %vm292_vm6 = vcmp.eq.s32.totalorder %v1707_v46, %v256_v12 }
  0xd5   : > { %v453_v28 = vsel %vm292_vm6, %v1685_v15, 0.0  ;;  %v271_v23 = vpop.permute.xlu2 %270  ;;  %v482_v15 = vsel %vm303_vm0, %v454_v30, 0.0  ;;  %v1827_v30 = vstv %s1240_s29 }
  0xd6   : > { %v479_v14 = vsel %vm303_vm0, %v453_v28, 0.0  ;;  %vm297_vm11 = vcmp.eq.s32.totalorder %v1707_v46, %v271_v23 }
  0xd7   : > { %v277_v45 = vpop.permute.xlu0 %276  ;;  %v458_v47 = vsel %vm297_vm11, %v1717_v54, 0.0 }
  0xd8   : > { %vm299_vm13 = vcmp.eq.s32.totalorder %v1707_v46, %v277_v45  ;;  %v494_v20 = vsel %vm303_vm0, %v458_v47, 0.0 }
  0xd9   : > { %474 = vadd.xlane.f32.xlu2 %v473_v8  ;;  %v460_v50 = vsel %vm299_vm13, %v1734_v13, 0.0 }
  0xda   : > { %v500_v51 = vsel %vm303_vm0, %v460_v50, 0.0 }
  0xdb   : > { %437 = vadd.xlane.f32.xlu0 %v436_v9  ;;  %v265_v29 = vpop.permute.xlu1 %264 }
  0xdc   : > { %vm295_vm9 = vcmp.eq.s32.totalorder %v1707_v46, %v265_v29  ;;  %v1825_v29 = vshrl.u32 %v237_v41, 7 }
  0xdd   : > { %v280_v35 = vpop.permute.xlu2 %279  ;;  %v456_v38 = vsel %vm295_vm9, %v1313_v26, 0.0 }
  0xde   : > { %425 = vadd.xlane.f32.xlu1 %v424_v6  ;;  %v488_v43 = vsel %vm303_vm0, %v456_v38, 0.0  ;;  %vm300_vm14 = vcmp.eq.s32.totalorder %v1707_v46, %v280_v35 }
  0xdf   : > { %v461_v52 = vsel %vm300_vm14, %v1315_v16, 0.0 }
  0xe0   : > { %v503_v54 = vsel %vm303_vm0, %v461_v52, 0.0 }
  0xe1   : > { %477 = vadd.xlane.f32.xlu2 %v476_v22 }
  0xe3   : > { %440 = vadd.xlane.f32.xlu0 %v439_v24  ;;  %v274_v40 = vpop.permute.xlu1 %273 }
  0xe4   : > { %vm298_vm12 = vcmp.eq.s32.totalorder %v1707_v46, %v274_v40 }
  0xe5   : > { %v459_v48 = vsel %vm298_vm12, %v1726_v60, 0.0  ;;  %v283_v49 = vpop.permute.xlu2 %282 }
  0xe6   : > { %480 = vadd.xlane.f32.xlu1 %v479_v14  ;;  %v497_v42 = vsel %vm303_vm0, %v459_v48, 0.0  ;;  %vm301_vm15 = vcmp.eq.s32.totalorder %v1707_v46, %v283_v49 }
  0xe7   : > { %v462_v53 = vsel %vm301_vm15, %v1317_v31, 0.0 }
  0xe8   : > { %v506_v19 = vsel %vm303_vm0, %v462_v53, 0.0 }
  0xe9   : > { %443 = vadd.xlane.f32.xlu2 %v442_v32 }
  0xeb   : > { %483 = vadd.xlane.f32.xlu0 %v482_v15 }
  0xee   : > { %446 = vadd.xlane.f32.xlu1 %v445_v36 }
  0xf1   : > { %486 = vadd.xlane.f32.xlu2 %v485_v39 }
  0xf3   : > { %489 = vadd.xlane.f32.xlu0 %v488_v43 }
  0xf6   : > { %492 = vadd.xlane.f32.xlu1 %v491_v21  ;;  %v1855_v21 = vadd.s32 %v1827_v30, %v1825_v29 }
  0xf9   : > { %495 = vadd.xlane.f32.xlu2 %v494_v20 }
  0xfb   : > { %498 = vadd.xlane.f32.xlu0 %v497_v42 }
  0xfe   : > { %501 = vadd.xlane.f32.xlu1 %v500_v51 }
 0x101   : > { %504 = vadd.xlane.f32.xlu2 %v503_v54 }
 0x103   : > { %507 = vadd.xlane.f32.xlu0 %v506_v19 }
 0x10e   : > { %v402_v55 = vpop.xlane.xlu1 %401 }
 0x10f   : > { %1320 = vrcp.f32 %v402_v55  ;;  %v521_v10 = vand.u32 2147483647, %v402_v55  ;;  %v523_v11 = vand.u32 2147483648, %v402_v55 }
 0x111   : > { %vm1816_vm6 = vcmp.eq.f32.partialorder %v521_v10, 8.507059e+37  ;;  %v524_v31 = vor.u32 1.1754944e-38, %v523_v11 }
 0x114   : > { %v405_v56 = vpop.xlane.xlu0 %404 }
 0x115   : > { %1322 = vrcp.f32 %v405_v56  ;;  %v1321_v59 = vpop.eup %1320  ;;  %v537_v16 = vand.u32 2147483648, %v405_v56  ;;  %vm531_vm3 = vweird.f32 %v405_v56  ;;  %v535_v18 = vand.u32 2147483647, %v405_v56 }
 0x116   : > { %v513_v60 = vmul.f32 %v1321_v59, %v402_v55  ;;  %vm518_vm2 = vweird.f32 %v1321_v59 }
 0x117   : > { %vm1838_vm8 = vcmp.eq.f32.partialorder %v535_v18, 8.507059e+37  ;;  %v538_v41 = vor.u32 1.1754944e-38, %v537_v16 }
 0x118   : > { %v514_v62 = vsub.f32 1.0, %v513_v60 }
 0x11a   : > { %v515_v7 = vmul.f32 %v1321_v59, %v514_v62 }
 0x11b   : > { %v1781_v61 = vpop.eup %1322 }
 0x11c   : > { %v1777_v57 = vpop.xlane.xlu2 %407  ;;  %v1779_v58 = vpop.xlane.xlu0 %410  ;;  %v527_v63 = vmul.f32 %v1781_v61, %v405_v56  ;;  %v516_v0 = vadd.f32 %v1321_v59, %v515_v7  ;;  %vm532_vm4 = vweird.f32 %v1781_v61 }
 0x11d   : > { %1324 = vrcp.f32 %v1777_v57  ;;  %vm1832_vm7 = vmor %vm531_vm3, %vm532_vm4  ;;  %v551_v15 = vand.u32 2147483648, %v1777_v57  ;;  %v565_v36 = vand.u32 2147483648, %v1779_v58  ;;  %v549_v38 = vand.u32 2147483647, %v1777_v57 }
 0x11e   : > { %1326 = vrcp.f32 %v1779_v58  ;;  %v528_v4 = vsub.f32 1.0, %v527_v63  ;;  %v563_v45 = vand.u32 2147483647, %v1779_v58  ;;  %vm545_vm9 = vweird.f32 %v1777_v57 }
 0x11f   : > { %vm559_vm10 = vweird.f32 %v1779_v58  ;;  %v552_v49 = vor.u32 1.1754944e-38, %v551_v15  ;;  %v566_v50 = vor.u32 1.1754944e-38, %v565_v36  ;;  %vm1870_vm12 = vcmp.eq.f32.partialorder %v549_v38, 8.507059e+37 }
 0x120   : > { %v529_v12 = vmul.f32 %v1781_v61, %v528_v4  ;;  %vm1879_vm14 = vcmp.eq.f32.partialorder %v563_v45, 8.507059e+37 }
 0x122   : > { %v530_v32 = vadd.f32 %v1781_v61, %v529_v12 }
 0x123   : > { %v1791_v1 = vpop.eup %1324 }
 0x124   : > { %v1784_v27 = vpop.xlane.xlu2 %413  ;;  %v1788_v2 = vpop.xlane.xlu0 %416  ;;  %v541_v9 = vmul.f32 %v1791_v1, %v1777_v57  ;;  %v534_v47 = vsel %vm1832_vm7, %v1781_v61, %v530_v32  ;;  %vm546_vm11 = vweird.f32 %v1791_v1 }
 0x125   : > { %1328 = vrcp.f32 %v1784_v27  ;;  %v1795_v8 = vpop.eup %1326  ;;  %v579_v51 = vand.u32 2147483648, %v1784_v27  ;;  %vm573_vm15 = vweird.f32 %v1784_v27  ;;  %v591_v7 = vand.u32 2147483647, %v1788_v2 }
 0x126   : > { %v286_v3 = vpop.permute.xlu1 %285  ;;  %1330 = vrcp.f32 %v1788_v2  ;;  %v555_v6 = vmul.f32 %v1795_v8, %v1779_v58  ;;  %v542_v17 = vsub.f32 1.0, %v541_v9  ;;  %vm560_vm13 = vweird.f32 %v1795_v8 }
 0x127   : > { %vm302_vm1 = vcmp.eq.s32.totalorder %v1707_v46, %v286_v3  ;;  %v577_v3 = vand.u32 2147483647, %v1784_v27  ;;  %v593_v11 = vand.u32 2147483648, %v1788_v2  ;;  %vm1916_vm3 = vmor %vm559_vm10, %vm560_vm13 }
 0x128   : > { %v463_v13 = vsel %vm302_vm1, %v1319_v33, 0.0  ;;  %v556_v33 = vsub.f32 1.0, %v555_v6  ;;  %v543_v35 = vmul.f32 %v1791_v1, %v542_v17  ;;  %vm1891_vm1 = vmor %vm545_vm9, %vm546_vm11 }
 0x129   : > { %v509_v5 = vsel %vm303_vm0, %v463_v13, 0.0  ;;  %vm517_vm0 = vweird.f32 %v402_v55  ;;  %vm1925_vm4 = vcmp.eq.f32.partialorder %v577_v3, 8.507059e+37 }
 0x12a   : > { %510 = vadd.xlane.f32.xlu1 %v509_v5  ;;  %vm1812_vm5 = vmor %vm517_vm0, %vm518_vm2  ;;  %v557_v42 = vmul.f32 %v1795_v8, %v556_v33  ;;  %v544_v53 = vadd.f32 %v1791_v1, %v543_v35  ;;  %v1896_v5 = vor.u32 1.1754944e-38, %v579_v51  ;;  %vm587_vm2 = vweird.f32 %v1788_v2 }
 0x12b   : > { %v1809_v22 = vpop.eup %1328  ;;  %v520_v14 = vsel %vm1812_vm5, %v1321_v59, %v516_v0  ;;  %v539_v59 = vsel %vm1838_vm8, %v538_v41, %v534_v47  ;;  %v594_v35 = vor.u32 1.1754944e-38, %v593_v11 }
 0x12c   : > { %v1800_v26 = vpop.xlane.xlu2 %419  ;;  %v1805_v25 = vpop.xlane.xlu0 %422  ;;  %v569_v40 = vmul.f32 %v1809_v22, %v1784_v27  ;;  %v525_v44 = vsel %vm1816_vm6, %v524_v31, %v520_v14  ;;  %v558_v4 = vadd.f32 %v1795_v8, %v557_v42  ;;  %v548_v57 = vsel %vm1891_vm1, %v1791_v1, %v544_v53 }
 0x12d   : > { %1332 = vrcp.f32 %v1800_v26  ;;  %v1820_v23 = vpop.eup %1330  ;;  %vm574_vm0 = vweird.f32 %v1809_v22  ;;  %vm1930_vm6 = vcmp.eq.f32.partialorder %v591_v7, 8.507059e+37  ;;  %v605_v58 = vand.u32 2147483647, %v1800_v26 }
 0x12e   : > { %1334 = vrcp.f32 %v1805_v25  ;;  %v583_v39 = vmul.f32 %v1820_v23, %v1788_v2  ;;  %v570_v56 = vsub.f32 1.0, %v569_v40  ;;  %v562_v28 = vsel %vm1916_vm3, %v1795_v8, %v558_v4  ;;  %vm1945_vm7 = vmor %vm573_vm15, %vm574_vm0 }
 0x12f   : > { %vm588_vm5 = vweird.f32 %v1820_v23  ;;  %v607_v32 = vand.u32 2147483648, %v1800_v26  ;;  %v553_v15 = vsel %vm1870_vm12, %v552_v49, %v548_v57  ;;  %vm601_vm9 = vweird.f32 %v1800_v26 }
 0x130   : > { %v584_v55 = vsub.f32 1.0, %v583_v39  ;;  %v571_v12 = vmul.f32 %v1809_v22, %v570_v56  ;;  %v1952_v39 = vsel %vm1879_vm14, %v566_v50, %v562_v28  ;;  %vm1958_vm8 = vmor %vm587_vm2, %vm588_vm5  ;;  %vm615_vm10 = vweird.f32 %v1805_v25 }
 0x131   : > { %v619_v47 = vand.u32 2147483647, %v1805_v25  ;;  %vm1970_vm11 = vcmp.eq.f32.partialorder %v605_v58, 8.507059e+37  ;;  %v608_v50 = vor.u32 1.1754944e-38, %v607_v32  ;;  %v1042_v53 = vadd.s32 8, %v1825_v29 }
 0x132   : > { %v585_v6 = vmul.f32 %v1820_v23, %v584_v55  ;;  %v572_v36 = vadd.f32 %v1809_v22, %v571_v12  ;;  %vm1075_vm2 = vcmp.lt.s32.totalorder %v1855_v21, 300  ;;  %vm1108_vm3 = vcmask 7168  }
 0x133   : > { %v1862_v48 = vpop.eup %1332  ;;  %vm1991_vm14 = vcmp.eq.f32.partialorder %v619_v47, 8.507059e+37 }
 0x134   : > { %v1848_v43 = vpop.xlane.xlu2 %428  ;;  %v1875_v19 = vpop.eup %1334  ;;  %v597_v61 = vmul.f32 %v1862_v48, %v1800_v26  ;;  %v586_v41 = vadd.f32 %v1820_v23, %v585_v6  ;;  %v576_v55 = vsel %vm1945_vm7, %v1809_v22, %v572_v36  ;;  %vm602_vm12 = vweird.f32 %v1862_v48 }
 0x135   : > { %v611_v9 = vmul.f32 %v1875_v19, %v1805_v25  ;;  %1336 = vrcp.f32 %v1848_v43  ;;  %vm616_vm13 = vweird.f32 %v1875_v19  ;;  %vm2002_vm15 = vmor %vm601_vm9, %vm602_vm12  ;;  %v581_v26 = vsel %vm1925_vm4, %v1896_v5, %v576_v55 }
 0x136   : > { %v466_v20 = vpop.xlane.xlu0 %465  ;;  %v598_v16 = vsub.f32 1.0, %v597_v61  ;;  %v590_v56 = vsel %vm1958_vm8, %v1820_v23, %v586_v41  ;;  %vm2027_vm1 = vmor %vm615_vm10, %vm616_vm13  ;;  %v1044_v41 = vadd.s32 24, %v1825_v29  ;;  %vm643_vm4 = vweird.f32 %v1848_v43 }
 0x137   : > { %v1866_v52 = vmul.f32 %v525_v44, %v466_v20  ;;  %v612_v33 = vsub.f32 1.0, %v611_v9  ;;  %v621_v20 = vand.u32 2147483648, %v1805_v25  ;;  %v2017_v1 = vsel %vm1930_vm6, %v594_v35, %v590_v56 }
 0x138   : > { %v599_v27 = vmul.f32 %v1862_v48, %v598_v16  ;;  %v1043_v16 = vadd.s32 16, %v1825_v29  ;;  %v2066_v56 = vadd.s32 %v1827_v30, %v1044_v41 }
 0x139   : > { %v752_v62 = vmul.f32 0.5, %v1866_v52  ;;  %v784_v63 = vadd.f32 1e-15, %v1866_v52  ;;  %v880_v45 = vsub.f32 1.0, %v1866_v52  ;;  %v613_v51 = vmul.f32 %v1875_v19, %v612_v33 }
 0x13a   : > { %v600_v61 = vadd.f32 %v1862_v48, %v599_v27  ;;  %v622_v12 = vor.u32 1.1754944e-38, %v621_v20  ;;  %v2037_v25 = vadd.s32 %v1827_v30, %v1043_v16  ;;  %vm1078_vm8 = vcmp.lt.s32.totalorder %v2066_v56, 300 }
 0x13b   : > { %v768_v10 = vadd.f32 0.5, %v752_v62  ;;  %1338 = vlog2.f32 %v784_v63  ;;  %v1964_v44 = vpop.eup %1336  ;;  %v896_v3 = vsub.f32 0.0, %v880_v45  ;;  %v614_v57 = vadd.f32 %v1875_v19, %v613_v51 }
 0x13c   : > { %v469_v0 = vpop.xlane.xlu2 %468  ;;  %v639_v62 = vmul.f32 %v1964_v44, %v1848_v43  ;;  %v604_v33 = vsel %vm2002_vm15, %v1862_v48, %v600_v61  ;;  %vm644_vm5 = vweird.f32 %v1964_v44  ;;  %vm1077_vm7 = vcmp.lt.s32.totalorder %v2037_v25, 300 }
 0x13d   : > { %v800_v17 = vadd.f32 1e-15, %v768_v10  ;;  %v1910_v18 = vmul.f32 %v539_v59, %v469_v0  ;;  %v2008_v0 = vadd.s32 %v1827_v30, %v1042_v53  ;;  %v912_v58 = vmul.f32 -0.6931472, %v896_v3  ;;  %vm2116_vm6 = vmor %vm643_vm4, %vm644_vm5 }
 0x13e   : > { %v1920_v24 = vpop.xlane.xlu0 %431  ;;  %v640_v28 = vsub.f32 1.0, %v639_v62  ;;  %v2049_v45 = vsel %vm1970_vm11, %v608_v50, %v604_v33 }
 0x13f   : > { %1340 = vlog2.f32 %v800_v17  ;;  %v753_v34 = vmul.f32 0.5, %v1910_v18  ;;  %v785_v8 = vadd.f32 1e-15, %v1910_v18  ;;  %v881_v4 = vsub.f32 1.0, %v1910_v18 }
 0x140   : > { %vm1076_vm0 = vcmp.lt.s32.totalorder %v2008_v0, 300  ;;  %v641_v47 = vmul.f32 %v1964_v44, %v640_v28 }
 0x141   : > { %v769_v38 = vadd.f32 0.5, %v753_v34  ;;  %v1339_v49 = vpop.eup %1338  ;;  %1342 = vlog2.f32 %v785_v8  ;;  %v897_v31 = vsub.f32 0.0, %v881_v4 }
 0x142   : > { %v929_v22 = vmul.f32 0.6931472, %v1339_v49  ;;  %v2071_v3 = vadd.f32 %v1964_v44, %v641_v47 }
 0x143   : > { %v801_v2 = vadd.f32 1e-15, %v769_v38 }
 0x144   : > { %v472_v54 = vpop.xlane.xlu2 %471 }
 0x145   : > { %v1341_v59 = vpop.eup %1340  ;;  %1344 = vlog2.f32 %v801_v2  ;;  %v1983_v60 = vmul.f32 %v553_v15, %v472_v54  ;;  %v913_v54 = vmul.f32 -0.6931472, %v897_v31 }
 0x146   : > { %v817_v63 = vmul.f32 0.6931472, %v1341_v59  ;;  %v1989_v13 = vpop.xlane.xlu0 %434  ;;  %1346 = vrcp.f32 %v1920_v24 }
 0x147   : > { %v754_v7 = vmul.f32 0.5, %v1983_v60  ;;  %v786_v9 = vadd.f32 1e-15, %v1983_v60  ;;  %v1343_v6 = vpop.eup %1342  ;;  %v882_v20 = vsub.f32 1.0, %v1983_v60 }
 0x148   : > { %v960_v11 = vsub.f32 %v929_v22, %v817_v63  ;;  %v848_v8 = vsub.f32 0.0, %v817_v63  ;;  %v931_v36 = vmul.f32 0.6931472, %v1343_v6  ;;  %v1045_v6 = vadd.s32 32, %v1825_v29 }
 0x149   : > { %v770_v17 = vadd.f32 0.5, %v754_v7  ;;  %1348 = vlog2.f32 %v786_v9  ;;  %v898_v23 = vsub.f32 0.0, %v882_v20 }
 0x14a   : > { %v976_v32 = vmul.f32 %v960_v11, %v1866_v52  ;;  %v618_v52 = vsel %vm2027_vm1, %v1875_v19, %v614_v57  ;;  %v864_v51 = vmul.f32 0.5, %v848_v8 }
 0x14b   : > { %v1345_v5 = vpop.eup %1344  ;;  %v802_v14 = vadd.f32 1e-15, %v770_v17  ;;  %v2057_v2 = vsel %vm1991_vm14, %v622_v12, %v618_v52 }
 0x14c   : > { %v992_v48 = vadd.f32 %v976_v32, %v912_v58  ;;  %v819_v15 = vmul.f32 0.6931472, %v1345_v5  ;;  %v475_v37 = vpop.xlane.xlu2 %474  ;;  %v2043_v38 = vpop.eup %1346 }
 0x14d   : > { %1350 = vlog2.f32 %v802_v14  ;;  %v2041_v35 = vmul.f32 %v1952_v39, %v475_v37  ;;  %v2062_v50 = vmul.f32 %v2043_v38, %v1920_v24  ;;  %v647_v37 = vand.u32 2147483647, %v1848_v43 }
 0x14e   : > { %v1008_v19 = vmul.f32 0.5, %v992_v48  ;;  %v961_v40 = vsub.f32 %v931_v36, %v819_v15  ;;  %v2045_v27 = vpop.xlane.xlu0 %437  ;;  %v849_v53 = vsub.f32 0.0, %v819_v15  ;;  %1352 = vrcp.f32 %v1989_v13 }
 0x14f   : > { %v755_v49 = vmul.f32 0.5, %v2041_v35  ;;  %v787_v39 = vadd.f32 1e-15, %v2041_v35  ;;  %v1349_v42 = vpop.eup %1348  ;;  %v654_v12 = vsub.f32 1.0, %v2062_v50  ;;  %v883_v32 = vsub.f32 1.0, %v2041_v35 }
 0x150   : > { %v977_v55 = vmul.f32 %v961_v40, %v1910_v18  ;;  %v1024_v62 = vadd.f32 %v1008_v19, %v864_v51  ;;  %v649_v18 = vand.u32 2147483648, %v1848_v43  ;;  %v865_v7 = vmul.f32 0.5, %v849_v53 }
 0x151   : > { %v771_v59 = vadd.f32 0.5, %v755_v49  ;;  %v2068_v61 = vpop.xlane.xlu1 %425  ;;  %1354 = vlog2.f32 %v787_v39  ;;  %v933_v57 = vmul.f32 0.6931472, %v1349_v42  ;;  %v899_v19 = vsub.f32 0.0, %v883_v32 }
 0x152   : > { %v993_v63 = vadd.f32 %v977_v55, %v913_v54  ;;  %v1091_v17 = vsel %vm1075_vm2, %v1024_v62, 0.0  ;;  %v1046_v54 = vadd.s32 40, %v1825_v29  ;;  %v633_v32 = vand.u32 2147483647, %v2068_v61 }
 0x153   : > { %v1351_v22 = vpop.eup %1350  ;;  %v803_v4 = vadd.f32 1e-15, %v771_v59  ;;  %v1109_v8 = vsel %vm1108_vm3, %v1091_v17, 0.0  ;;  %vm629_vm9 = vweird.f32 %v2068_v61  ;;  %vm2185_vm12 = vcmp.eq.f32.partialorder %v647_v37, 8.507059e+37 }
 0x154   : > { %v1009_v9 = vmul.f32 0.5, %v993_v63  ;;  %v2075_v10 = vmul.f32 0.6931472, %v1351_v22  ;;  %v478_v11 = vpop.xlane.xlu2 %477  ;;  %v2087_v34 = vpop.eup %1352  ;;  %vm634_vm15 = vcmp.eq.f32.partialorder %v633_v32, 8.507059e+37  ;;  %vm657_vm2 = vweird.f32 %v1920_v24 }
 0x155   : > { %1356 = vlog2.f32 %v803_v4  ;;  %v2079_v16 = vmul.f32 %v581_v26, %v478_v11  ;;  %v914_v26 = vmul.f32 -0.6931472, %v898_v23  ;;  %v2104_v0 = vmul.f32 %v2087_v34, %v1989_v13 }
 0x156   : > { %v1025_v28 = vadd.f32 %v1009_v9, %v865_v7  ;;  %v962_v58 = vsub.f32 %v933_v57, %v2075_v10  ;;  %v2085_v33 = vpop.xlane.xlu0 %440  ;;  %1358 = vrcp.f32 %v2068_v61  ;;  %v850_v42 = vsub.f32 0.0, %v2075_v10 }
 0x157   : > { %v756_v5 = vmul.f32 0.5, %v2079_v16  ;;  %v788_v31 = vadd.f32 1e-15, %v2079_v16  ;;  %1360 = vrcp.f32 %v2045_v27  ;;  %v1355_v52 = vpop.eup %1354  ;;  %v884_v23 = vsub.f32 1.0, %v2079_v16 }
 0x158   : > { %v1092_v21 = vsel %vm1076_vm0, %v1025_v28, 0.0  ;;  %v978_v14 = vmul.f32 %v962_v58, %v1983_v60  ;;  %v2107_v60 = vadd.s32 %v1827_v30, %v1045_v6  ;;  %v935_v53 = vmul.f32 0.6931472, %v1355_v52 }
 0x159   : > { %v1110_v48 = vsel %vm1108_vm3, %v1092_v21, 0.0  ;;  %v772_v15 = vadd.f32 0.5, %v756_v5  ;;  %v481_v36 = vpop.xlane.xlu1 %480  ;;  %1362 = vlog2.f32 %v788_v31  ;;  %v646_v4 = vsel %vm2116_vm6, %v1964_v44, %v2071_v3 }
 0x15a   : > { %v2100_v41 = vadd.f32 %v1110_v48, %v1109_v8  ;;  %v994_v47 = vadd.f32 %v978_v14, %v914_v26  ;;  %v2110_v49 = vmul.f32 %v2017_v1, %v481_v36  ;;  %1364 = vrcp.f32 %v2085_v33 }
 0x15b   : > { %v1357_v40 = vpop.eup %1356  ;;  %v804_v20 = vadd.f32 1e-15, %v772_v15  ;;  %v2137_v7 = vor.u32 1.1754944e-38, %v649_v18  ;;  %v668_v10 = vsub.f32 1.0, %v2104_v0  ;;  %v915_v57 = vmul.f32 -0.6931472, %v899_v19 }
 0x15c   : > { %v823_v51 = vmul.f32 0.6931472, %v1357_v40  ;;  %v2123_v55 = vpop.xlane.xlu2 %443  ;;  %v2125_v1 = vpop.eup %1358  ;;  %v757_v59 = vmul.f32 0.5, %v2110_v49  ;;  %v789_v62 = vadd.f32 1e-15, %v2110_v49  ;;  %v1010_v9 = vmul.f32 0.5, %v994_v47 }
 0x15d   : > { %1366 = vlog2.f32 %v804_v20  ;;  %v2130_v63 = vpop.eup %1360  ;;  %v625_v17 = vmul.f32 %v2125_v1, %v2068_v61  ;;  %v2144_v28 = vadd.s32 %v1827_v30, %v1046_v54  ;;  %v866_v31 = vmul.f32 0.5, %v850_v42 }
 0x15e   : > { %v963_v22 = vsub.f32 %v935_v53, %v823_v51  ;;  %v773_v11 = vadd.f32 0.5, %v757_v59  ;;  %v484_v58 = vpop.xlane.xlu0 %483  ;;  %v2149_v18 = vmul.f32 %v2130_v63, %v2045_v27  ;;  %1368 = vlog2.f32 %v789_v62 }
 0x15f   : > { %v1363_v5 = vpop.eup %1362  ;;  %v900_v14 = vsub.f32 0.0, %v884_v23  ;;  %v885_v52 = vsub.f32 1.0, %v2110_v49  ;;  %v1047_v8 = vadd.s32 48, %v1825_v29  ;;  %v1026_v15 = vadd.f32 %v1010_v9, %v866_v31 }
 0x160   : > { %v979_v6 = vmul.f32 %v963_v22, %v2041_v35  ;;  %v805_v21 = vadd.f32 1e-15, %v773_v11  ;;  %v2151_v26 = vpop.eup %1364  ;;  %v851_v36 = vsub.f32 0.0, %v823_v51  ;;  %v2157_v19 = vmul.f32 %v2049_v45, %v484_v58 }
 0x161   : > { %v626_v40 = vsub.f32 1.0, %v625_v17  ;;  %v937_v20 = vmul.f32 0.6931472, %v1363_v5  ;;  %v635_v53 = vand.u32 2147483648, %v2068_v61  ;;  %v682_v42 = vsub.f32 1.0, %v2149_v18  ;;  %v2175_v31 = vpop.xlane.xlu1 %446 }
 0x162   : > { %v995_v35 = vadd.f32 %v979_v6, %v915_v57  ;;  %1370 = vlog2.f32 %v805_v21  ;;  %v758_v59 = vmul.f32 0.5, %v2157_v19  ;;  %v790_v62 = vadd.f32 1e-15, %v2157_v19 }
 0x163   : > { %v1367_v48 = vpop.eup %1366  ;;  %v916_v22 = vmul.f32 -0.6931472, %v900_v14  ;;  %v2166_v45 = vmul.f32 %v2151_v26, %v2085_v33  ;;  %v901_v23 = vsub.f32 0.0, %v885_v52  ;;  %v1093_v11 = vsel %vm1077_vm7, %v1026_v15, 0.0 }
 0x164   : > { %v825_v47 = vmul.f32 0.6931472, %v1367_v48  ;;  %v1011_v54 = vmul.f32 0.5, %v995_v35  ;;  %v487_v9 = vpop.xlane.xlu2 %486  ;;  %v1369_v57 = vpop.eup %1368  ;;  %v867_v6 = vmul.f32 0.5, %v851_v36  ;;  %v2171_v17 = vadd.s32 %v1827_v30, %v1047_v8 }
 0x165   : > { %v774_v58 = vadd.f32 0.5, %v758_v59  ;;  %1372 = vrcp.f32 %v2123_v55  ;;  %v627_v21 = vmul.f32 %v2125_v1, %v626_v40  ;;  %vm630_vm10 = vweird.f32 %v2125_v1 }
 0x166   : > { %v964_v51 = vsub.f32 %v937_v20, %v825_v47  ;;  %v1027_v14 = vadd.f32 %v1011_v54, %v867_v6  ;;  %vm1079_vm11 = vcmp.lt.s32.totalorder %v2107_v60, 300  ;;  %1374 = vlog2.f32 %v790_v62  ;;  %vm2206_vm13 = vmor %vm629_vm9, %vm630_vm10 }
 0x167   : > { %v806_v25 = vadd.f32 1e-15, %v774_v58  ;;  %v2181_v52 = vmul.f32 %v2057_v2, %v487_v9  ;;  %v852_v8 = vsub.f32 0.0, %v825_v47  ;;  %v939_v36 = vmul.f32 0.6931472, %v1369_v57 }
 0x168   : > { %v980_v5 = vmul.f32 %v964_v51, %v2079_v16  ;;  %v1371_v35 = vpop.eup %1370  ;;  %v886_v40 = vsub.f32 1.0, %v2157_v19  ;;  %v1112_v2 = vsel %vm1108_vm3, %v1093_v11, 0.0  ;;  %v696_v43 = vsub.f32 1.0, %v2166_v45 }
 0x169   : > { %v827_v15 = vmul.f32 0.6931472, %v1371_v35  ;;  %1376 = vlog2.f32 %v806_v25  ;;  %v759_v20 = vmul.f32 0.5, %v2181_v52  ;;  %v791_v54 = vadd.f32 1e-15, %v2181_v52 }
 0x16a   : > { %v996_v48 = vadd.f32 %v980_v5, %v916_v22  ;;  %v917_v62 = vmul.f32 -0.6931472, %v901_v23  ;;  %1378 = vrcp.f32 %v2175_v31  ;;  %v628_v22 = vadd.f32 %v2125_v1, %v627_v21 }
 0x16b   : > { %v965_v37 = vsub.f32 %v939_v36, %v827_v15  ;;  %v775_v47 = vadd.f32 0.5, %v759_v20  ;;  %v2196_v51 = vpop.eup %1372  ;;  %v1094_v9 = vsel %vm1078_vm8, %v1027_v14, 0.0  ;;  %v868_v57 = vmul.f32 0.5, %v852_v8  ;;  %v490_v8 = vpop.xlane.xlu0 %489 }
 0x16c   : > { %v1012_v59 = vmul.f32 0.5, %v996_v48  ;;  %v1048_v11 = vadd.s32 56, %v1825_v29  ;;  %v1375_v58 = vpop.eup %1374  ;;  %v902_v5 = vsub.f32 0.0, %v886_v40  ;;  %1380 = vlog2.f32 %v791_v54 }
 0x16d   : > { %v981_v6 = vmul.f32 %v965_v37, %v2110_v49  ;;  %v807_v21 = vadd.f32 1e-15, %v775_v47  ;;  %v632_v56 = vsel %vm2206_vm13, %v2125_v1, %v628_v22  ;;  %v1113_v49 = vadd.f32 %v1112_v2, %v2100_v41  ;;  %v493_v2 = vpop.xlane.xlu1 %492 }
 0x16e   : > { %v1028_v35 = vadd.f32 %v1012_v59, %v868_v57  ;;  %v636_v25 = vor.u32 1.1754944e-38, %v635_v53  ;;  %v1114_v36 = vsel %vm1108_vm3, %v1094_v9, 0.0  ;;  %vm1080_vm14 = vcmp.lt.s32.totalorder %v2144_v28, 300 }
 0x16f   : > { %v997_v14 = vadd.f32 %v981_v6, %v917_v62  ;;  %v1377_v48 = vpop.eup %1376  ;;  %v2218_v40 = vmul.f32 %v2196_v51, %v2123_v55  ;;  %1382 = vlog2.f32 %v807_v21  ;;  %v853_v1 = vsub.f32 0.0, %v827_v15 }
 0x170   : > { %v829_v20 = vmul.f32 0.6931472, %v1377_v48  ;;  %v941_v41 = vmul.f32 0.6931472, %v1375_v58  ;;  %v637_v54 = vsel %vm634_vm15, %v636_v25, %v632_v56  ;;  %v2222_v53 = vpop.eup %1378  ;;  %v918_v59 = vmul.f32 -0.6931472, %v902_v5 }
 0x171   : > { %v2225_v37 = vadd.s32 %v1827_v30, %v1048_v11  ;;  %v887_v62 = vsub.f32 1.0, %v2181_v52  ;;  %v2228_v47 = vmul.f32 %v637_v54, %v490_v8  ;;  %v1095_v22 = vsel %vm1079_vm11, %v1028_v35, 0.0 }
 0x172   : > { %v1013_v61 = vmul.f32 0.5, %v997_v14  ;;  %v966_v32 = vsub.f32 %v941_v41, %v829_v20  ;;  %v651_v15 = vsel %vm2185_vm12, %v2137_v7, %v646_v4  ;;  %v1381_v9 = vpop.eup %1380  ;;  %v1115_v57 = vadd.f32 %v1114_v36, %v1113_v49 }
 0x173   : > { %v760_v6 = vmul.f32 0.5, %v2228_v47  ;;  %v792_v11 = vadd.f32 1e-15, %v2228_v47  ;;  %v2242_v23 = vmul.f32 %v651_v15, %v493_v2  ;;  %v869_v60 = vmul.f32 0.5, %v853_v1 }
 0x174   : > { %v710_v58 = vsub.f32 1.0, %v2218_v40  ;;  %v982_v39 = vmul.f32 %v966_v32, %v2157_v19  ;;  %v2248_v44 = vmul.f32 %v2222_v53, %v2175_v31  ;;  %v1116_v4 = vsel %vm1108_vm3, %v1095_v22, 0.0 }
 0x175   : > { %v1383_v3 = vpop.eup %1382  ;;  %v903_v7 = vsub.f32 0.0, %v887_v62  ;;  %v1049_v16 = vadd.s32 64, %v1825_v29  ;;  %v776_v5 = vadd.f32 0.5, %v760_v6  ;;  %v1029_v21 = vadd.f32 %v1013_v61, %v869_v60 }
 0x176   : > { %v831_v56 = vmul.f32 0.6931472, %v1383_v3  ;;  %v943_v49 = vmul.f32 0.6931472, %v1381_v9  ;;  %1384 = vlog2.f32 %v792_v11  ;;  %v854_v35 = vsub.f32 0.0, %v829_v20 }
 0x177   : > { %v998_v14 = vadd.f32 %v982_v39, %v918_v59  ;;  %v808_v25 = vadd.f32 1e-15, %v776_v5  ;;  %v761_v19 = vmul.f32 0.5, %v2242_v23  ;;  %v724_v8 = vsub.f32 1.0, %v2248_v44  ;;  %v496_v5 = vpop.xlane.xlu2 %495 }
 0x178   : > { %v967_v48 = vsub.f32 %v943_v49, %v831_v56  ;;  %v888_v36 = vsub.f32 1.0, %v2228_v47  ;;  %v793_v1 = vadd.f32 1e-15, %v2242_v23  ;;  %v919_v41 = vmul.f32 -0.6931472, %v903_v7 }
 0x179   : > { %1386 = vlog2.f32 %v808_v25  ;;  %v777_v54 = vadd.f32 0.5, %v761_v19  ;;  %v655_v2 = vmul.f32 %v2043_v38, %v654_v12  ;;  %v1117_v62 = vadd.f32 %v1116_v4, %v1115_v57 }
 0x17a   : > { %v1096_v20 = vsel %vm1080_vm14, %v1029_v21, 0.0  ;;  %vm1081_vm1 = vcmp.lt.s32.totalorder %v2171_v17, 300  ;;  %v983_v59 = vmul.f32 %v967_v48, %v2181_v52  ;;  %v2264_v22 = vadd.s32 %v1827_v30, %v1049_v16 }
 0x17b   : > { %v870_v61 = vmul.f32 0.5, %v854_v35  ;;  %v1014_v32 = vmul.f32 0.5, %v998_v14  ;;  %v809_v15 = vadd.f32 1e-15, %v777_v54  ;;  %v656_v9 = vadd.f32 %v2043_v38, %v655_v2 }
 0x17c   : > { %v1385_v6 = vpop.eup %1384  ;;  %v904_v50 = vsub.f32 0.0, %v888_v36  ;;  %1388 = vlog2.f32 %v793_v1  ;;  %vm658_vm0 = vweird.f32 %v2043_v38  ;;  %v999_v12 = vadd.f32 %v983_v59, %v919_v41  ;;  %v499_v59 = vpop.xlane.xlu0 %498 }
 0x17d   : > { %1390 = vlog2.f32 %v809_v15  ;;  %vm2269_vm4 = vmor %vm657_vm2, %vm658_vm0  ;;  %v661_v52 = vand.u32 2147483647, %v1920_v24  ;;  %v663_v57 = vand.u32 2147483648, %v1920_v24  ;;  %vm1082_vm5 = vcmp.lt.s32.totalorder %v2225_v37, 300 }
 0x17e   : > { %v855_v11 = vsub.f32 0.0, %v831_v56  ;;  %v889_v60 = vsub.f32 1.0, %v2242_v23  ;;  %v660_v39 = vsel %vm2269_vm4, %v2043_v38, %v656_v9  ;;  %v669_v3 = vmul.f32 %v2087_v34, %v668_v10 }
 0x17f   : > { %v1387_v4 = vpop.eup %1386  ;;  %v1030_v7 = vadd.f32 %v1014_v32, %v870_v61  ;;  %v945_v16 = vmul.f32 0.6931472, %v1385_v6  ;;  %v664_v21 = vor.u32 1.1754944e-38, %v663_v57  ;;  %vm672_vm6 = vweird.f32 %v2087_v34 }
 0x180   : > { %v833_v24 = vmul.f32 0.6931472, %v1387_v4  ;;  %vm662_vm7 = vcmp.eq.f32.partialorder %v661_v52, 8.507059e+37  ;;  %v670_v56 = vadd.f32 %v2087_v34, %v669_v3  ;;  %v675_v49 = vand.u32 2147483647, %v1989_v13 }
 0x181   : > { %v1015_v35 = vmul.f32 0.5, %v999_v12  ;;  %v665_v14 = vsel %vm662_vm7, %v664_v21, %v660_v39  ;;  %vm671_vm8 = vweird.f32 %v1989_v13  ;;  %v677_v38 = vand.u32 2147483648, %v1989_v13 }
 0x182   : > { %v1389_v0 = vpop.eup %1388  ;;  %v1118_v10 = vsel %vm1108_vm3, %v1096_v20, 0.0  ;;  %v968_v25 = vsub.f32 %v945_v16, %v833_v24  ;;  %v1050_v19 = vadd.s32 72, %v1825_v29  ;;  %v2290_v48 = vmul.f32 %v665_v14, %v496_v5  ;;  %vm673_vm9 = vmor %vm671_vm8, %vm672_vm6 }
 0x183   : > { %v1391_v36 = vpop.eup %1390  ;;  %v871_v1 = vmul.f32 0.5, %v855_v11  ;;  %v920_v41 = vmul.f32 -0.6931472, %v904_v50  ;;  %v674_v54 = vsel %vm673_vm9, %v2087_v34, %v670_v56  ;;  %v678_v2 = vor.u32 1.1754944e-38, %v677_v38 }
 0x184   : > { %v984_v61 = vmul.f32 %v968_v25, %v2228_v47  ;;  %v835_v32 = vmul.f32 0.6931472, %v1391_v36  ;;  %v905_v13 = vsub.f32 0.0, %v889_v60  ;;  %vm676_vm10 = vcmp.eq.f32.partialorder %v675_v49, 8.507059e+37  ;;  %v502_v36 = vpop.xlane.xlu1 %501 }
 0x185   : > { %v1097_v20 = vsel %vm1081_vm1, %v1030_v7, 0.0  ;;  %v1031_v15 = vadd.f32 %v1015_v35, %v871_v1  ;;  %v762_v9 = vmul.f32 0.5, %v2290_v48  ;;  %v679_v6 = vsel %vm676_vm10, %v678_v2, %v674_v54 }
 0x186   : > { %v947_v12 = vmul.f32 0.6931472, %v1389_v0  ;;  %v794_v28 = vadd.f32 1e-15, %v2290_v48  ;;  %v2298_v50 = vmul.f32 %v679_v6, %v499_v59  ;;  %v683_v34 = vmul.f32 %v2130_v63, %v682_v42 }
 0x187   : > { %v1119_v47 = vadd.f32 %v1118_v10, %v1117_v62  ;;  %v1000_v52 = vadd.f32 %v984_v61, %v920_v41  ;;  %v2304_v57 = vadd.s32 %v1827_v30, %v1050_v19  ;;  %v778_v17 = vadd.f32 0.5, %v762_v9 }
 0x188   : > { %v1120_v11 = vsel %vm1108_vm3, %v1097_v20, 0.0  ;;  %v921_v60 = vmul.f32 -0.6931472, %v905_v13  ;;  %v969_v39 = vsub.f32 %v947_v12, %v835_v32  ;;  %v763_v3 = vmul.f32 0.5, %v2298_v50 }
 0x189   : > { %v1098_v4 = vsel %vm1082_vm5, %v1031_v15, 0.0  ;;  %vm1083_vm11 = vcmp.lt.s32.totalorder %v2264_v22, 300  ;;  %v856_v18 = vsub.f32 0.0, %v833_v24  ;;  %v810_v7 = vadd.f32 1e-15, %v778_v17 }
 0x18a   : > { %v795_v42 = vadd.f32 1e-15, %v2298_v50  ;;  %v890_v62 = vsub.f32 1.0, %v2290_v48  ;;  %1392 = vlog2.f32 %v794_v28  ;;  %v779_v16 = vadd.f32 0.5, %v763_v3  ;;  %v505_v28 = vpop.xlane.xlu2 %504 }
 0x18b   : > { %v684_v5 = vadd.f32 %v2130_v63, %v683_v34  ;;  %v1016_v21 = vmul.f32 0.5, %v1000_v52  ;;  %1394 = vlog2.f32 %v810_v7  ;;  %vm686_vm12 = vweird.f32 %v2130_v63 }
 0x18c   : > { %v691_v56 = vand.u32 2147483648, %v2045_v27  ;;  %v985_v37 = vmul.f32 %v969_v39, %v2242_v23  ;;  %v811_v49 = vadd.f32 1e-15, %v779_v16  ;;  %vm685_vm13 = vweird.f32 %v2045_v27 }
 0x18d   : > { %v689_v24 = vand.u32 2147483647, %v2045_v27  ;;  %v1121_v35 = vadd.f32 %v1120_v11, %v1119_v47  ;;  %v1122_v14 = vsel %vm1108_vm3, %v1098_v4, 0.0  ;;  %v872_v38 = vmul.f32 0.5, %v856_v18  ;;  %vm2320_vm14 = vmor %vm685_vm13, %vm686_vm12 }
 0x18e   : > { %1396 = vlog2.f32 %v795_v42  ;;  %v857_v10 = vsub.f32 0.0, %v835_v32  ;;  %v906_v25 = vsub.f32 0.0, %v890_v62  ;;  %v688_v23 = vsel %vm2320_vm14, %v2130_v63, %v684_v5 }
 0x18f   : > { %1398 = vlog2.f32 %v811_v49  ;;  %v1032_v19 = vadd.f32 %v1016_v21, %v872_v38  ;;  %v692_v1 = vor.u32 1.1754944e-38, %v691_v56  ;;  %v697_v27 = vmul.f32 %v2151_v26, %v696_v43 }
 0x190   : > { %vm700_vm15 = vweird.f32 %v2151_v26  ;;  %v1393_v41 = vpop.eup %1392  ;;  %v1001_v54 = vadd.f32 %v985_v37, %v921_v60  ;;  %vm690_vm1 = vcmp.eq.f32.partialorder %v689_v24, 8.507059e+37  ;;  %v703_v2 = vand.u32 2147483647, %v2085_v33 }
 0x191   : > { %v705_v59 = vand.u32 2147483648, %v2085_v33  ;;  %v1395_v61 = vpop.eup %1394  ;;  %v2333_v32 = vadd.f32 %v1122_v14, %v1121_v35  ;;  %v693_v63 = vsel %vm690_vm1, %v692_v1, %v688_v23  ;;  %v698_v13 = vadd.f32 %v2151_v26, %v697_v27 }
 0x192   : > { %vm699_vm2 = vweird.f32 %v2085_v33  ;;  %v873_v45 = vmul.f32 0.5, %v857_v10  ;;  %v2337_v20 = vmul.f32 -0.6931472, %v906_v25  ;;  %v891_v43 = vsub.f32 1.0, %v2298_v50 }
 0x193   : > { %v2340_v15 = vmul.f32 %v693_v63, %v502_v36  ;;  %vm2344_vm0 = vmor %vm699_vm2, %vm700_vm15  ;;  %v837_v12 = vmul.f32 0.6931472, %v1395_v61  ;;  %v706_v34 = vor.u32 1.1754944e-38, %v705_v59  ;;  %v711_v47 = vmul.f32 %v2196_v51, %v710_v58  ;;  %v508_v36 = vpop.xlane.xlu0 %507 }
 0x194   : > { %v1397_v6 = vpop.eup %1396  ;;  %v702_v33 = vsel %vm2344_vm0, %v2151_v26, %v698_v13  ;;  %v1099_v17 = vsel %vm1083_vm11, %v1032_v19, 0.0  ;;  %v1017_v11 = vmul.f32 0.5, %v1001_v54  ;;  %vm704_vm4 = vcmp.eq.f32.partialorder %v703_v2, 8.507059e+37 }
 0x195   : > { %v1399_v52 = vpop.eup %1398  ;;  %v764_v60 = vmul.f32 0.5, %v2340_v15  ;;  %v949_v39 = vmul.f32 0.6931472, %v1393_v41  ;;  %v796_v4 = vadd.f32 1e-15, %v2340_v15  ;;  %v707_v18 = vsel %vm704_vm4, %v706_v34, %v702_v33 }
 0x196   : > { %v839_v3 = vmul.f32 0.6931472, %v1399_v52  ;;  %v907_v7 = vsub.f32 0.0, %v891_v43  ;;  %v2358_v42 = vmul.f32 %v707_v18, %v505_v28  ;;  %vm714_vm5 = vweird.f32 %v2196_v51 }
 0x197   : > { %v780_v26 = vadd.f32 0.5, %v764_v60  ;;  %v970_v40 = vsub.f32 %v949_v39, %v837_v12  ;;  %v951_v58 = vmul.f32 0.6931472, %v1397_v6  ;;  %1400 = vlog2.f32 %v796_v4 }
 0x198   : > { %v712_v22 = vadd.f32 %v2196_v51, %v711_v47  ;;  %v765_v16 = vmul.f32 0.5, %v2358_v42  ;;  %v797_v5 = vadd.f32 1e-15, %v2358_v42  ;;  %v719_v21 = vand.u32 2147483648, %v2123_v55 }
 0x199   : > { %v812_v62 = vadd.f32 1e-15, %v780_v26  ;;  %v971_v56 = vsub.f32 %v951_v58, %v839_v3  ;;  %v892_v37 = vsub.f32 1.0, %v2340_v15  ;;  %vm713_vm6 = vweird.f32 %v2123_v55 }
 0x19a   : > { %v717_v49 = vand.u32 2147483647, %v2123_v55  ;;  %v2369_v24 = vsel %vm1108_vm3, %v1099_v17, 0.0  ;;  %v2371_v35 = vadd.f32 %v1017_v11, %v873_v45  ;;  %v781_v14 = vadd.f32 0.5, %v765_v16  ;;  %vm2375_vm7 = vmor %vm713_vm6, %vm714_vm5 }
 0x19b   : > { %1402 = vlog2.f32 %v812_v62  ;;  %v858_v0 = vsub.f32 0.0, %v837_v12  ;;  %v986_v10 = vmul.f32 %v970_v40, %v2290_v48  ;;  %v716_v55 = vsel %vm2375_vm7, %v2196_v51, %v712_v22 }
 0x19c   : > { %1404 = vlog2.f32 %v797_v5  ;;  %v859_v25 = vsub.f32 0.0, %v839_v3  ;;  %v813_v23 = vadd.f32 1e-15, %v781_v14  ;;  %v720_v19 = vor.u32 1.1754944e-38, %v719_v21 }
 0x19d   : > { %v725_v1 = vmul.f32 %v2222_v53, %v724_v8  ;;  %v1401_v27 = vpop.eup %1400  ;;  %v987_v41 = vmul.f32 %v971_v56, %v2298_v50  ;;  %v908_v54 = vsub.f32 0.0, %v892_v37  ;;  %v893_v2 = vsub.f32 1.0, %v2358_v42  ;;  %v511_v60 = vpop.xlane.xlu1 %510 }
 0x19e   : > { %vm718_vm8 = vcmp.eq.f32.partialorder %v717_v49, 8.507059e+37  ;;  %1406 = vlog2.f32 %v813_v23  ;;  %vm728_vm9 = vweird.f32 %v2222_v53  ;;  %vm1084_vm10 = vcmp.lt.s32.totalorder %v2304_v57, 300 }
 0x19f   : > { %v721_v48 = vsel %vm718_vm8, %v720_v19, %v716_v55  ;;  %v726_v59 = vadd.f32 %v2222_v53, %v725_v1  ;;  %v874_v51 = vmul.f32 0.5, %v858_v0  ;;  %v923_v61 = vmul.f32 -0.6931472, %v907_v7 }
 0x1a0   : > { %v2391_v44 = vmul.f32 %v721_v48, %v508_v36  ;;  %v733_v8 = vand.u32 2147483648, %v2175_v31  ;;  %v1002_v50 = vadd.f32 %v986_v10, %v2337_v20  ;;  %v953_v13 = vmul.f32 0.6931472, %v1401_v27 }
 0x1a1   : > { %v1403_v63 = vpop.eup %1402  ;;  %vm727_vm11 = vweird.f32 %v2175_v31  ;;  %v731_v45 = vand.u32 2147483647, %v2175_v31  ;;  %v875_v9 = vmul.f32 0.5, %v859_v25  ;;  %v1003_v34 = vadd.f32 %v987_v41, %v923_v61 }
 0x1a2   : > { %v1405_v43 = vpop.eup %1404  ;;  %v841_v6 = vmul.f32 0.6931472, %v1403_v63  ;;  %v766_v12 = vmul.f32 0.5, %v2391_v44  ;;  %v798_v28 = vadd.f32 1e-15, %v2391_v44  ;;  %vm2401_vm12 = vmor %vm727_vm11, %vm728_vm9  ;;  %v909_v47 = vsub.f32 0.0, %v893_v2 }
 0x1a3   : > { %v924_v20 = vmul.f32 -0.6931472, %v908_v54  ;;  %v730_v31 = vsel %vm2401_vm12, %v2222_v53, %v726_v59  ;;  %v734_v11 = vor.u32 1.1754944e-38, %v733_v8  ;;  %v1051_v39 = vadd.s32 80, %v1825_v29 }
 0x1a4   : > { %v972_v52 = vsub.f32 %v953_v13, %v841_v6  ;;  %v782_v17 = vadd.f32 0.5, %v766_v12  ;;  %v1407_v3 = vpop.eup %1406  ;;  %v955_v4 = vmul.f32 0.6931472, %v1405_v43  ;;  %1408 = vlog2.f32 %v798_v28 }
 0x1a5   : > { %vm732_vm13 = vcmp.eq.f32.partialorder %v731_v45, 8.507059e+37  ;;  %v1052_v18 = vadd.s32 88, %v1825_v29  ;;  %v843_v26 = vmul.f32 0.6931472, %v1407_v3  ;;  %v1018_v22 = vmul.f32 0.5, %v1002_v50 }
 0x1a6   : > { %v988_v7 = vmul.f32 %v972_v52, %v2340_v15  ;;  %v814_v40 = vadd.f32 1e-15, %v782_v17  ;;  %v735_v58 = vsel %vm732_vm13, %v734_v11, %v730_v31  ;;  %v1019_v62 = vmul.f32 0.5, %v1003_v34 }
 0x1a7   : > { %v2411_v53 = vmul.f32 %v735_v58, %v511_v60  ;;  %v1053_v16 = vadd.s32 96, %v1825_v29  ;;  %v973_v21 = vsub.f32 %v955_v4, %v843_v26  ;;  %v894_v56 = vsub.f32 1.0, %v2391_v44 }
 0x1a8   : > { %v1004_v5 = vadd.f32 %v988_v7, %v924_v20  ;;  %1410 = vlog2.f32 %v814_v40  ;;  %v1069_v15 = vadd.s32 %v1827_v30, %v1051_v39  ;;  %v1070_v14 = vadd.s32 %v1827_v30, %v1052_v18 }
 0x1a9   : > { %v767_v37 = vmul.f32 0.5, %v2411_v53  ;;  %v799_v49 = vadd.f32 1e-15, %v2411_v53  ;;  %v860_v38 = vsub.f32 0.0, %v841_v6  ;;  %v925_v0 = vmul.f32 -0.6931472, %v909_v47 }
 0x1aa   : > { %v989_v10 = vmul.f32 %v973_v21, %v2358_v42  ;;  %v1054_v55 = vadd.s32 104, %v1825_v29  ;;  %v1409_v25 = vpop.eup %1408  ;;  %v1100_v23 = vsel %vm1084_vm10, %v2371_v35, 0.0  ;;  %v1034_v19 = vadd.f32 %v1018_v22, %v874_v51 }
 0x1ab   : > { %v1035_v36 = vadd.f32 %v1019_v62, %v875_v9  ;;  %v783_v1 = vadd.f32 0.5, %v767_v37  ;;  %v1020_v27 = vmul.f32 0.5, %v1004_v5  ;;  %v910_v54 = vsub.f32 0.0, %v894_v56 }
 0x1ac   : > { %v1005_v41 = vadd.f32 %v989_v10, %v925_v0  ;;  %v1071_v2 = vadd.s32 %v1827_v30, %v1053_v16  ;;  %1412 = vlog2.f32 %v799_v49  ;;  %vm1085_vm14 = vcmp.lt.s32.totalorder %v1069_v15, 300 }
 0x1ad   : > { %v815_v48 = vadd.f32 1e-15, %v783_v1  ;;  %vm1086_vm15 = vcmp.lt.s32.totalorder %v1070_v14, 300  ;;  %v861_v59 = vsub.f32 0.0, %v843_v26  ;;  %v876_v61 = vmul.f32 0.5, %v860_v38 }
 0x1ae   : > { %v1411_v42 = vpop.eup %1410  ;;  %v1055_v8 = vadd.s32 112, %v1825_v29  ;;  %v1072_v57 = vadd.s32 %v1827_v30, %v1054_v55  ;;  %v957_v51 = vmul.f32 0.6931472, %v1409_v25  ;;  %v1101_v63 = vsel %vm1085_vm14, %v1034_v19, 0.0 }
 0x1af   : > { %v845_v35 = vmul.f32 0.6931472, %v1411_v42  ;;  %1414 = vlog2.f32 %v815_v48  ;;  %v1021_v50 = vmul.f32 0.5, %v1005_v41  ;;  %v1036_v13 = vadd.f32 %v1020_v27, %v876_v61 }
 0x1b0   : > { %v1102_v45 = vsel %vm1086_vm15, %v1035_v36, 0.0  ;;  %v1125_v43 = vadd.f32 %v2369_v24, %v2333_v32  ;;  %vm1087_vm1 = vcmp.lt.s32.totalorder %v1071_v2, 300  ;;  %v1126_v6 = vsel %vm1108_vm3, %v1100_v23, 0.0 }
 0x1b1   : > { %v974_v9 = vsub.f32 %v957_v51, %v845_v35  ;;  %v1128_v12 = vsel %vm1108_vm3, %v1101_v63, 0.0  ;;  %v895_v28 = vsub.f32 1.0, %v2411_v53  ;;  %v877_v33 = vmul.f32 0.5, %v861_v59 }
 0x1b2   : > { %v1127_v34 = vadd.f32 %v1126_v6, %v1125_v43  ;;  %v1413_v20 = vpop.eup %1412  ;;  %v926_v47 = vmul.f32 -0.6931472, %v910_v54  ;;  %v862_v52 = vsub.f32 0.0, %v845_v35  ;;  %v1130_v17 = vsel %vm1108_vm3, %v1102_v45, 0.0 }
 0x1b3   : > { %v990_v31 = vmul.f32 %v974_v9, %v2391_v44  ;;  %v1037_v11 = vadd.f32 %v1021_v50, %v877_v33  ;;  %v1103_v60 = vsel %vm1087_vm1, %v1036_v13, 0.0  ;;  %v1073_v3 = vadd.s32 %v1827_v30, %v1055_v8 }
 0x1b4   : > { %v1129_v32 = vadd.f32 %v1128_v12, %v1127_v34  ;;  %vm1088_vm2 = vcmp.lt.s32.totalorder %v1072_v57, 300  ;;  %v911_v18 = vsub.f32 0.0, %v895_v28  ;;  %v959_v7 = vmul.f32 0.6931472, %v1413_v20 }
 0x1b5   : > { %v1415_v24 = vpop.eup %1414  ;;  %v1006_v39 = vadd.f32 %v990_v31, %v926_v47  ;;  %v878_v40 = vmul.f32 0.5, %v862_v52  ;;  %v1056_v22 = vadd.s32 120, %v1825_v29  ;;  %v1132_v44 = vsel %vm1108_vm3, %v1103_v60, 0.0 }
 0x1b6   : > { %v847_v4 = vmul.f32 0.6931472, %v1415_v24  ;;  %v1131_v26 = vadd.f32 %v1130_v17, %v1129_v32  ;;  %v1104_v16 = vsel %vm1088_vm2, %v1037_v11, 0.0  ;;  %vm1089_vm0 = vcmp.lt.s32.totalorder %v1073_v3, 300 }
 0x1b7   : > { %v1022_v58 = vmul.f32 0.5, %v1006_v39  ;;  %v927_v21 = vmul.f32 -0.6931472, %v911_v18  ;;  %v1074_v15 = vadd.s32 %v1827_v30, %v1056_v22  ;;  %v1134_v14 = vsel %vm1108_vm3, %v1104_v16, 0.0 }
 0x1b8   : > { %v975_v62 = vsub.f32 %v959_v7, %v847_v4  ;;  %v863_v37 = vsub.f32 0.0, %v847_v4  ;;  %v1133_v49 = vadd.f32 %v1132_v44, %v1131_v26 }
 0x1b9   : > { %v1038_v5 = vadd.f32 %v1022_v58, %v878_v40  ;;  %vm1090_vm4 = vcmp.lt.s32.totalorder %v1074_v15, 300 }
 0x1ba   : > { %v991_v56 = vmul.f32 %v975_v62, %v2411_v53  ;;  %v879_v10 = vmul.f32 0.5, %v863_v37  ;;  %v1135_v29 = vadd.f32 %v1134_v14, %v1133_v49 }
 0x1bb   : > { %v1105_v0 = vsel %vm1089_vm0, %v1038_v5, 0.0 }
 0x1bc   : > { %v1007_v38 = vadd.f32 %v991_v56, %v927_v21  ;;  %v1136_v25 = vsel %vm1108_vm3, %v1105_v0, 0.0 }
 0x1bd   : > { %v1137_v36 = vadd.f32 %v1136_v25, %v1135_v29 }
 0x1be   : > { %v1023_v55 = vmul.f32 0.5, %v1007_v38 }
 0x1c0   : > { %v1039_v23 = vadd.f32 %v1023_v55, %v879_v10 }
 0x1c2   : > { %v1106_v19 = vsel %vm1090_vm4, %v1039_v23, 0.0 }
 0x1c3   : > { %v1138_v53 = vsel %vm1108_vm3, %v1106_v19, 0.0  ;;  %vm1107_vm3 = vcmp.eq.s32.totalorder %v1707_v46, 0 }
 0x1c4   : > { %v1139_v1 = vadd.f32 %v1138_v53, %v1137_v36 }
 0x1c6   : > { %1140 = vadd.xlane.f32.xlu2 %v1139_v1 }
 0x239   : > { %v1141_v30 = vpop.xlane.xlu2 %1140 }
 0x23a   : > { %v1142_v27 = vrot.slane %v1141_v30, 4 }
 0x23c   : > { %v1143_v41 = vadd.f32 %v1142_v27, %v1141_v30 }
 0x23e   : > { %v1144_v54 = vrot.slane %v1143_v41, 2 }
 0x240   : > { %v1145_v2 = vadd.f32 %v1144_v54, %v1143_v41 }
 0x242   : > { %v1146_v48 = vrot.slane %v1145_v2, 1 }
 0x244   : > { %v1147_v42 = vadd.f32 %v1146_v48, %v1145_v2 }
 0x246   : > { %1243 = vpush %v1147_v42 }
 0x277   : > { %s1244_s14 = spop %1243 }
 0x278   : > { %v1149_v59 = vstv %s1244_s14 }
 0x279   : > { %v1150_v61 = vsel %vm1107_vm3, %v1149_v59, 0.0 }
 0x27a   : > { %1151 = vst [vmem:[%s176_s6] sm:$0x1] %v1150_v61 }
 0x27b   : > { %1443 = shalt.err (!%p1440_p3)
}
 0x27c   : > { %1245 = dma.vmem_to_hbm [thread:$0]  (%p1534_p5), %s1164_s7, 16, %s1166_s8, %s1153_s16  }
 0x27d PF: > { %p1251_p4 = scmp.ge.s32.totalorder %s1478_s12, 2  ;;  %s1177_s26 = sand.u32 1, %s1466_s9  }
 0x27e   : > { %s1178_s27 = scalar_lea.sflag [#allocation3], %s1177_s26 }
 0x27f   : > { %p1248_p7 = pnand %p1251_p4, %p1538_p6 }
 0x281   : > { %p1249_p8 = pneg %p1248_p7 }
 0x283   : > { %1461 = dma.done.wait (%p1249_p8), %s1178_s27, 16  }
 0x284   : > { %1463 = vsyncadd (%p1249_p8), %s1178_s27, 4294967280  ;;  %p12_p9 = scmp.ge.s32.totalorder %s1521_s15, 5   ;;  %s2528_s9 = smov %s1470_s10 }
 0x285   : > { %s2529_s10 = smov %s1474_s11  ;;  %s2530_s11 = smov %s1532_s18 }
 0x286   : > { %s2531_s12 = smov %s1521_s15  ;;  %14 = sbr.rel (!%p12_p9) target bundleno = 3 (0x3), region = 66 }
 0x28b   :  { %1183 = vsyncpa [#allocation3], 1 }
 0x28c   :  { %1185 = vsyncpa [#allocation3 + $0x1], 1 }

</bundles_post_ra>
